<compile_context>
chip_gen: v6e
topology: v6e:2x2x1
jax: 0.10.0
libtpu: 0.0.40
codegen_flags: <defaults>
</compile_context>

<pallas_src>
import jax
import jax.numpy as jnp
from jax.experimental import pallas as pl
from jax.experimental.pallas import tpu as pltpu  # noqa: F401

# ---- model hyper-parameters (the "args" of MultiLSTNet) ----
BATCH        = 2
INPUT_SIZE   = 16     # T
NUM_FEATURES = 4      # F
NUM_TARGETS  = 4      # nt  (must equal NUM_FEATURES for the highway view)
OUTPUT_SIZE  = 6      # horizon
RNN_HID      = 16     # H
CNN_HID      = 8      # C
KERNEL_SIZE  = 3      # K
HIGHWAY_SIZE = 5      # hw
T_CONV       = INPUT_SIZE - KERNEL_SIZE + 1   # valid-conv output length
B_PAD        = 8      # batch padded to one sublane tile
# output_fun == 'sigmoid'


def _sigmoid_tanh(v):
    # sigmoid(x) == 0.5*(1 + tanh(0.5*x)); a single EUP transcendental, no
    # fp32 divide on the serial per-step dependence chain.
    return 0.5 * (1.0 + jnp.tanh(0.5 * v))


def _ceil8(n):
    return -(-n // 8) * 8


def _build_layout(entries):
    """entries: [(name, rows, cols)] -> (layout, total_rows, width).

    Row offsets padded to multiples of 8 so every carve-out is sublane
    aligned. Everything is static Python, known at trace time."""
    layout, off = {}, 0
    width = max(c for _, _, c in entries)
    for name, r, c in entries:
        layout[name] = (off, r, c)
        off += _ceil8(r)
    return layout, off, width


def _pack(layout, total_rows, width, arrays):
    slab = jnp.zeros((total_rows, width), jnp.float32)
    for name, a in arrays.items():
        r0, r, c = layout[name]
        slab = slab.at[r0:r0 + r, 0:c].set(a.astype(jnp.float32))
    return slab


# -------------------- fused Pallas kernel --------------------
def _make_kernel(data_layout, par_layout):
    H, NT, OUT, TC = RNN_HID, NUM_TARGETS, OUTPUT_SIZE, T_CONV

    def _ld(ref, layout, name):
        r0, r, c = layout[name]
        return ref[r0:r0 + r, 0:c]     # static slice -> cheap view + load

    def kernel(data_ref, par_ref, out_ref):
        x_win = _ld(data_ref, data_layout, "x_win")   # (T_CONV*B_PAD, K*F)
        z3    = _ld(data_ref, data_layout, "z3")      # (B_PAD, F*HW)
        cw    = _ld(par_ref, par_layout, "cw")        # (K*F, C)
        cb    = _ld(par_ref, par_layout, "cb")        # (1, C)
        wih1  = _ld(par_ref, par_layout, "wih1")      # (C, 4H)
        whh1  = _ld(par_ref, par_layout, "whh1")      # (H, 4H)
        b1    = _ld(par_ref, par_layout, "b1")        # (1, 4H)
        wih2  = _ld(par_ref, par_layout, "wih2")      # (H, 4NT)
        whh2  = _ld(par_ref, par_layout, "whh2")      # (NT, 4NT)
        b2    = _ld(par_ref, par_layout, "b2")        # (1, 4NT)
        whw   = _ld(par_ref, par_layout, "whw")       # (F*HW, F*OUT)
        bhw   = _ld(par_ref, par_layout, "bhw")       # (1, F*OUT)

        # ---- conv (im2col form) + ReLU for the whole padded batch ----
        conv = jnp.maximum(
            jnp.dot(x_win, cw, preferred_element_type=jnp.float32) + cb, 0.0)

        # ---- LSTM1: input projection hoisted out of the recurrence ----
        gx1 = jnp.dot(conv, wih1, preferred_element_type=jnp.float32) + b1
        h1 = jnp.zeros((B_PAD, H), jnp.float32)
        c1 = jnp.zeros((B_PAD, H), jnp.float32)
        for t in range(TC):
            # 8-row aligned slice: free view, no sublane rotation on the chain
            g = gx1[t * B_PAD:(t + 1) * B_PAD, :] + jnp.dot(
                h1, whh1, preferred_element_type=jnp.float32)
            sg = _sigmoid_tanh(g[:, :3 * H])          # [i | f | o] gates
            gg = jnp.tanh(g[:, 3 * H:])               # g gate
            c1 = sg[:, H:2 * H] * c1 + sg[:, :H] * gg
            h1 = sg[:, 2 * H:3 * H] * jnp.tanh(c1)

        # ---- LSTM2: constant input h1 -> its projection computed once ----
        gx2 = jnp.dot(h1, wih2, preferred_element_type=jnp.float32) + b2
        h2 = jnp.zeros((B_PAD, NT), jnp.float32)
        c2 = jnp.zeros((B_PAD, NT), jnp.float32)
        outs = []
        for _ in range(OUT):
            g = gx2 + jnp.dot(h2, whh2, preferred_element_type=jnp.float32)
            sg = _sigmoid_tanh(g[:, :3 * NT])
            gg = jnp.tanh(g[:, 3 * NT:])
            c2 = sg[:, NT:2 * NT] * c2 + sg[:, :NT] * gg
            h2 = sg[:, 2 * NT:3 * NT] * jnp.tanh(c2)
            outs.append(h2)                           # accumulate in registers
        res = jnp.concatenate(outs, axis=1)           # (B_PAD, OUT*NT), flat view(-1,OUT,NT) layout

        # ---- highway (block-diag matmul) + residual + sigmoid; ONE store ----
        hwv = jnp.dot(z3, whw, preferred_element_type=jnp.float32) + bhw
        out_ref[...] = _sigmoid_tanh(res + hwv)

    return kernel


# -------------------- wrapper --------------------
def _reorder_gates(w, h):
    # PyTorch LSTM gate order (i, f, g, o) -> (i, f, o, g) so the three sigmoid
    # gates are contiguous and share one wide transcendental per step.
    return jnp.concatenate([w[0:h], w[h:2 * h], w[3 * h:4 * h], w[2 * h:3 * h]], axis=0)


@jax.jit
def multilstnet_forward(x, p):
    # The PyTorch highway view(-1, output_size, num_targets) is only a pure
    # reinterpretation when num_features == num_targets.
    assert NUM_FEATURES == NUM_TARGETS, "highway view requires F == num_targets"
    B = x.shape[0]
    T, F, NT, OUT = INPUT_SIZE, NUM_FEATURES, NUM_TARGETS, OUTPUT_SIZE
    H, C, K, HW = RNN_HID, CNN_HID, KERNEL_SIZE, HIGHWAY_SIZE

    # ---- parameter glue (fuses / constant-folds under jit) ----
    cw = jnp.transpose(p["conv_w"][:, 0].reshape(C, K * F))        # (K*F, C)
    cb = p["conv_b"][None, :]                                      # (1, C)
    wih1 = _reorder_gates(p["w_ih1"], H).T                         # (C, 4H)
    whh1 = _reorder_gates(p["w_hh1"], H).T                         # (H, 4H)
    b1 = _reorder_gates(p["b_ih1"] + p["b_hh1"], H)[None, :]       # (1, 4H)
    wih2 = _reorder_gates(p["w_ih2"], NT).T                        # (H, 4NT)
    whh2 = _reorder_gates(p["w_hh2"], NT).T                        # (NT, 4NT)
    b2 = _reorder_gates(p["b_ih2"] + p["b_hh2"], NT)[None, :]      # (1, 4NT)
    # Highway as block-diag matmul -> result already in view(-1, OUT, NT) flat layout.
    whw_big = jnp.kron(jnp.eye(F, dtype=jnp.float32), p["w_hw"].T)  # (F*HW, F*OUT)
    bhw_big = jnp.tile(p["b_hw"], F)[None, :]                       # (1, F*OUT)

    # ---- input glue: pad batch to 8, im2col windows (time-major), highway slab ----
    x_pad = jnp.zeros((B_PAD, T, F), jnp.float32).at[:B].set(x)
    win = jnp.stack([x_pad[:, k:k + T_CONV, :] for k in range(K)], axis=2)   # (8,TC,K,F)
    x_win = jnp.transpose(win, (1, 0, 2, 3)).reshape(T_CONV * B_PAD, K * F)  # (TC*8, K*F)
    z3 = jnp.transpose(x_pad[:, T - HW:, :], (0, 2, 1)).reshape(B_PAD, F * HW)

    # ---- pack everything into 2 slabs -> 2 input DMAs ----
    data_layout, d_rows, d_width = _build_layout(
        [("x_win", T_CONV * B_PAD, K * F), ("z3", B_PAD, F * HW)])
    par_layout, p_rows, p_width = _build_layout(
        [("cw", K * F, C), ("cb", 1, C),
         ("wih1", C, 4 * H), ("whh1", H, 4 * H), ("b1", 1, 4 * H),
         ("wih2", H, 4 * NT), ("whh2", NT, 4 * NT), ("b2", 1, 4 * NT),
         ("whw", F * HW, F * OUT), ("bhw", 1, F * OUT)])

    data_slab = _pack(data_layout, d_rows, d_width, {"x_win": x_win, "z3": z3})
    par_slab = _pack(par_layout, p_rows, p_width,
                     {"cw": cw, "cb": cb, "wih1": wih1, "whh1": whh1, "b1": b1,
                      "wih2": wih2, "whh2": whh2, "b2": b2,
                      "whw": whw_big, "bhw": bhw_big})

    # Single kernel invocation, no grid: the few-KB working set lives whole in
    # VMEM on every TPU generation; output is one lane-dense slab.
    out_flat = pl.pallas_call(
        _make_kernel(data_layout, par_layout),
        out_shape=jax.ShapeDtypeStruct((B_PAD, OUT * NT), jnp.float32),
    )(data_slab, par_slab)

    return out_flat[:B].reshape(B, OUT, NT)


# -------------------- pure-JAX reference (for correctness check) --------------------
def _sigmoid_exact(v):
    return 1.0 / (1.0 + jnp.exp(-v))


def ref_forward(x, p):
    B = x.shape[0]
    H, nt = RNN_HID, NUM_TARGETS
    c = jnp.zeros((B, T_CONV, CNN_HID), jnp.float32)
    for k in range(KERNEL_SIZE):
        c = c + jnp.einsum("btf,of->bto", x[:, k:k + T_CONV, :], p["conv_w"][:, 0, k, :])
    c = jnp.maximum(c + p["conv_b"], 0.0)

    h = jnp.zeros((B, H)); cc = jnp.zeros((B, H))
    for t in range(T_CONV):
        g = c[:, t, :] @ p["w_ih1"].T + h @ p["w_hh1"].T + p["b_ih1"] + p["b_hh1"]
        i = _sigmoid_exact(g[:, :H]); f = _sigmoid_exact(g[:, H:2 * H])
        gg = jnp.tanh(g[:, 2 * H:3 * H]); o = _sigmoid_exact(g[:, 3 * H:])
        cc = f * cc + i * gg
        h = o * jnp.tanh(cc)

    xc = h @ p["w_ih2"].T + p["b_ih2"] + p["b_hh2"]
    h2 = jnp.zeros((B, nt)); c2 = jnp.zeros((B, nt))
    outs = []
    for _ in range(OUTPUT_SIZE):
        g = xc + h2 @ p["w_hh2"].T
        i = _sigmoid_exact(g[:, :nt]); f = _sigmoid_exact(g[:, nt:2 * nt])
        gg = jnp.tanh(g[:, 2 * nt:3 * nt]); o = _sigmoid_exact(g[:, 3 * nt:])
        c2 = f * c2 + i * gg
        h2 = o * jnp.tanh(c2)
        outs.append(h2)
    res = jnp.stack(outs, axis=1)                                  # (B, OUT, nt)

    z = x[:, -HIGHWAY_SIZE:, :]
    z = jnp.transpose(z, (0, 2, 1)).reshape(B * NUM_FEATURES, HIGHWAY_SIZE)
    z = z @ p["w_hw"].T + p["b_hw"]
    z = z.reshape(B, OUTPUT_SIZE, NUM_TARGETS)
    return _sigmoid_exact(res + z)


if __name__ == "__main__":
    key = jax.random.PRNGKey(0)
    keys = jax.random.split(key, 16)

    def u(k, shape, scale=0.2):
        return jax.random.uniform(k, shape, jnp.float32, -scale, scale)

    params = dict(
        conv_w=u(keys[0], (CNN_HID, 1, KERNEL_SIZE, NUM_FEATURES)),
        conv_b=u(keys[1], (CNN_HID,)),
        w_ih1=u(keys[2], (4 * RNN_HID, CNN_HID)),
        w_hh1=u(keys[3], (4 * RNN_HID, RNN_HID)),
        b_ih1=u(keys[4], (4 * RNN_HID,)),
        b_hh1=u(keys[5], (4 * RNN_HID,)),
        w_ih2=u(keys[6], (4 * NUM_TARGETS, RNN_HID)),
        w_hh2=u(keys[7], (4 * NUM_TARGETS, NUM_TARGETS)),
        b_ih2=u(keys[8], (4 * NUM_TARGETS,)),
        b_hh2=u(keys[9], (4 * NUM_TARGETS,)),
        w_hw=u(keys[10], (OUTPUT_SIZE, HIGHWAY_SIZE)),
        b_hw=u(keys[11], (OUTPUT_SIZE,)),
    )
    x = jax.random.normal(keys[12], (BATCH, INPUT_SIZE, NUM_FEATURES), jnp.float32)

    out = jax.block_until_ready(multilstnet_forward(x, params))
    ref = jax.block_until_ready(ref_forward(x, params))

    assert out.shape == (BATCH, OUTPUT_SIZE, NUM_TARGETS)
    err = float(jnp.max(jnp.abs(out - ref)))
    assert err < 1e-4, f"max abs err {err}"
    print("KERNEL_OK")
</pallas_src>

<mosaic_0001>
module attributes {stable_mosaic.version = 11 : i64} {
  func.func @kernel(%arg0: memref<120x20xf32, #tpu.memory_space<vmem>>, %arg1: memref<120x64xf32, #tpu.memory_space<vmem>>, %arg2: memref<8x24xf32, #tpu.memory_space<vmem>>) attributes {dimension_semantics = [], scalar_prefetch = 0 : i64, scratch_operands = 0 : i64, tpu.core_type = #tpu.core_type<tc>} {
    %c0 = arith.constant 0 : index
    %c0_0 = arith.constant 0 : index
    %0 = vector.load %arg0[%c0, %c0_0] : memref<120x20xf32, #tpu.memory_space<vmem>>, vector<112x12xf32>
    %c112 = arith.constant 112 : index
    %c0_1 = arith.constant 0 : index
    %1 = vector.load %arg0[%c112, %c0_1] : memref<120x20xf32, #tpu.memory_space<vmem>>, vector<8x20xf32>
    %c0_2 = arith.constant 0 : index
    %c0_3 = arith.constant 0 : index
    %2 = vector.load %arg1[%c0_2, %c0_3] : memref<120x64xf32, #tpu.memory_space<vmem>>, vector<12x8xf32>
    %c16 = arith.constant 16 : index
    %c0_4 = arith.constant 0 : index
    %3 = vector.load %arg1[%c16, %c0_4] : memref<120x64xf32, #tpu.memory_space<vmem>>, vector<1x8xf32>
    %c24 = arith.constant 24 : index
    %c0_5 = arith.constant 0 : index
    %4 = vector.load %arg1[%c24, %c0_5] : memref<120x64xf32, #tpu.memory_space<vmem>>, vector<8x64xf32>
    %c32 = arith.constant 32 : index
    %c0_6 = arith.constant 0 : index
    %5 = vector.load %arg1[%c32, %c0_6] : memref<120x64xf32, #tpu.memory_space<vmem>>, vector<16x64xf32>
    %c48 = arith.constant 48 : index
    %c0_7 = arith.constant 0 : index
    %6 = vector.load %arg1[%c48, %c0_7] : memref<120x64xf32, #tpu.memory_space<vmem>>, vector<1x64xf32>
    %c56 = arith.constant 56 : index
    %c0_8 = arith.constant 0 : index
    %7 = vector.load %arg1[%c56, %c0_8] : memref<120x64xf32, #tpu.memory_space<vmem>>, vector<16x16xf32>
    %c72 = arith.constant 72 : index
    %c0_9 = arith.constant 0 : index
    %8 = vector.load %arg1[%c72, %c0_9] : memref<120x64xf32, #tpu.memory_space<vmem>>, vector<4x16xf32>
    %c80 = arith.constant 80 : index
    %c0_10 = arith.constant 0 : index
    %9 = vector.load %arg1[%c80, %c0_10] : memref<120x64xf32, #tpu.memory_space<vmem>>, vector<1x16xf32>
    %c88 = arith.constant 88 : index
    %c0_11 = arith.constant 0 : index
    %10 = vector.load %arg1[%c88, %c0_11] : memref<120x64xf32, #tpu.memory_space<vmem>>, vector<20x24xf32>
    %c112_12 = arith.constant 112 : index
    %c0_13 = arith.constant 0 : index
    %11 = vector.load %arg1[%c112_12, %c0_13] : memref<120x64xf32, #tpu.memory_space<vmem>>, vector<1x24xf32>
    %cst = arith.constant dense<0.000000e+00> : vector<112x8xf32>
    %12 = tpu.matmul %0, %2, %cst {dimension_numbers = #tpu.dot_dimension_numbers<[1], [0], [0], [1], [0, 0, 1, 1], [], []>} : vector<112x12xf32>, vector<12x8xf32>, vector<112x8xf32> -> vector<112x8xf32>
    %13 = vector.broadcast %3 : vector<1x8xf32> to vector<112x8xf32>
    %14 = arith.addf %12, %13 : vector<112x8xf32>
    %cst_14 = arith.constant 0.000000e+00 : f32
    %15 = vector.broadcast %cst_14 : f32 to vector<112x8xf32>
    %16 = arith.maximumf %14, %15 : vector<112x8xf32>
    %cst_15 = arith.constant dense<0.000000e+00> : vector<112x64xf32>
    %17 = tpu.matmul %16, %4, %cst_15 {dimension_numbers = #tpu.dot_dimension_numbers<[1], [0], [0], [1], [0, 0, 1, 1], [], []>} : vector<112x8xf32>, vector<8x64xf32>, vector<112x64xf32> -> vector<112x64xf32>
    %18 = vector.broadcast %6 : vector<1x64xf32> to vector<112x64xf32>
    %19 = arith.addf %17, %18 : vector<112x64xf32>
    %cst_16 = arith.constant 0.000000e+00 : f32
    %20 = vector.broadcast %cst_16 : f32 to vector<8x16xf32>
    %cst_17 = arith.constant 0.000000e+00 : f32
    %21 = vector.broadcast %cst_17 : f32 to vector<8x16xf32>
    %22 = vector.extract_strided_slice %19 {offsets = [0, 0], sizes = [8, 64], strides = [1, 1]} : vector<112x64xf32> to vector<8x64xf32>
    %cst_18 = arith.constant dense<0.000000e+00> : vector<8x64xf32>
    %23 = tpu.matmul %20, %5, %cst_18 {dimension_numbers = #tpu.dot_dimension_numbers<[1], [0], [0], [1], [0, 0, 1, 1], [], []>} : vector<8x16xf32>, vector<16x64xf32>, vector<8x64xf32> -> vector<8x64xf32>
    %24 = arith.addf %22, %23 : vector<8x64xf32>
    %25 = vector.extract_strided_slice %24 {offsets = [0, 0], sizes = [8, 48], strides = [1, 1]} : vector<8x64xf32> to vector<8x48xf32>
    %cst_19 = arith.constant 5.000000e-01 : f32
    %26 = vector.broadcast %cst_19 : f32 to vector<8x48xf32>
    %27 = arith.mulf %26, %25 : vector<8x48xf32>
    %28 = math.tanh %27 : vector<8x48xf32>
    %cst_20 = arith.constant 1.000000e+00 : f32
    %29 = vector.broadcast %cst_20 : f32 to vector<8x48xf32>
    %30 = arith.addf %29, %28 : vector<8x48xf32>
    %cst_21 = arith.constant 5.000000e-01 : f32
    %31 = vector.broadcast %cst_21 : f32 to vector<8x48xf32>
    %32 = arith.mulf %31, %30 : vector<8x48xf32>
    %33 = vector.extract_strided_slice %24 {offsets = [0, 48], sizes = [8, 16], strides = [1, 1]} : vector<8x64xf32> to vector<8x16xf32>
    %34 = math.tanh %33 : vector<8x16xf32>
    %35 = vector.extract_strided_slice %32 {offsets = [0, 16], sizes = [8, 16], strides = [1, 1]} : vector<8x48xf32> to vector<8x16xf32>
    %36 = arith.mulf %35, %21 : vector<8x16xf32>
    %37 = vector.extract_strided_slice %32 {offsets = [0, 0], sizes = [8, 16], strides = [1, 1]} : vector<8x48xf32> to vector<8x16xf32>
    %38 = arith.mulf %37, %34 : vector<8x16xf32>
    %39 = arith.addf %36, %38 : vector<8x16xf32>
    %40 = vector.extract_strided_slice %32 {offsets = [0, 32], sizes = [8, 16], strides = [1, 1]} : vector<8x48xf32> to vector<8x16xf32>
    %41 = math.tanh %39 : vector<8x16xf32>
    %42 = arith.mulf %40, %41 : vector<8x16xf32>
    %43 = vector.extract_strided_slice %19 {offsets = [8, 0], sizes = [8, 64], strides = [1, 1]} : vector<112x64xf32> to vector<8x64xf32>
    %cst_22 = arith.constant dense<0.000000e+00> : vector<8x64xf32>
    %44 = tpu.matmul %42, %5, %cst_22 {dimension_numbers = #tpu.dot_dimension_numbers<[1], [0], [0], [1], [0, 0, 1, 1], [], []>} : vector<8x16xf32>, vector<16x64xf32>, vector<8x64xf32> -> vector<8x64xf32>
    %45 = arith.addf %43, %44 : vector<8x64xf32>
    %46 = vector.extract_strided_slice %45 {offsets = [0, 0], sizes = [8, 48], strides = [1, 1]} : vector<8x64xf32> to vector<8x48xf32>
    %cst_23 = arith.constant 5.000000e-01 : f32
    %47 = vector.broadcast %cst_23 : f32 to vector<8x48xf32>
    %48 = arith.mulf %47, %46 : vector<8x48xf32>
    %49 = math.tanh %48 : vector<8x48xf32>
    %cst_24 = arith.constant 1.000000e+00 : f32
    %50 = vector.broadcast %cst_24 : f32 to vector<8x48xf32>
    %51 = arith.addf %50, %49 : vector<8x48xf32>
    %cst_25 = arith.constant 5.000000e-01 : f32
    %52 = vector.broadcast %cst_25 : f32 to vector<8x48xf32>
    %53 = arith.mulf %52, %51 : vector<8x48xf32>
    %54 = vector.extract_strided_slice %45 {offsets = [0, 48], sizes = [8, 16], strides = [1, 1]} : vector<8x64xf32> to vector<8x16xf32>
    %55 = math.tanh %54 : vector<8x16xf32>
    %56 = vector.extract_strided_slice %53 {offsets = [0, 16], sizes = [8, 16], strides = [1, 1]} : vector<8x48xf32> to vector<8x16xf32>
    %57 = arith.mulf %56, %39 : vector<8x16xf32>
    %58 = vector.extract_strided_slice %53 {offsets = [0, 0], sizes = [8, 16], strides = [1, 1]} : vector<8x48xf32> to vector<8x16xf32>
    %59 = arith.mulf %58, %55 : vector<8x16xf32>
    %60 = arith.addf %57, %59 : vector<8x16xf32>
    %61 = vector.extract_strided_slice %53 {offsets = [0, 32], sizes = [8, 16], strides = [1, 1]} : vector<8x48xf32> to vector<8x16xf32>
    %62 = math.tanh %60 : vector<8x16xf32>
    %63 = arith.mulf %61, %62 : vector<8x16xf32>
    %64 = vector.extract_strided_slice %19 {offsets = [16, 0], sizes = [8, 64], strides = [1, 1]} : vector<112x64xf32> to vector<8x64xf32>
    %cst_26 = arith.constant dense<0.000000e+00> : vector<8x64xf32>
    %65 = tpu.matmul %63, %5, %cst_26 {dimension_numbers = #tpu.dot_dimension_numbers<[1], [0], [0], [1], [0, 0, 1, 1], [], []>} : vector<8x16xf32>, vector<16x64xf32>, vector<8x64xf32> -> vector<8x64xf32>
    %66 = arith.addf %64, %65 : vector<8x64xf32>
    %67 = vector.extract_strided_slice %66 {offsets = [0, 0], sizes = [8, 48], strides = [1, 1]} : vector<8x64xf32> to vector<8x48xf32>
    %cst_27 = arith.constant 5.000000e-01 : f32
    %68 = vector.broadcast %cst_27 : f32 to vector<8x48xf32>
    %69 = arith.mulf %68, %67 : vector<8x48xf32>
    %70 = math.tanh %69 : vector<8x48xf32>
    %cst_28 = arith.constant 1.000000e+00 : f32
    %71 = vector.broadcast %cst_28 : f32 to vector<8x48xf32>
    %72 = arith.addf %71, %70 : vector<8x48xf32>
    %cst_29 = arith.constant 5.000000e-01 : f32
    %73 = vector.broadcast %cst_29 : f32 to vector<8x48xf32>
    %74 = arith.mulf %73, %72 : vector<8x48xf32>
    %75 = vector.extract_strided_slice %66 {offsets = [0, 48], sizes = [8, 16], strides = [1, 1]} : vector<8x64xf32> to vector<8x16xf32>
    %76 = math.tanh %75 : vector<8x16xf32>
    %77 = vector.extract_strided_slice %74 {offsets = [0, 16], sizes = [8, 16], strides = [1, 1]} : vector<8x48xf32> to vector<8x16xf32>
    %78 = arith.mulf %77, %60 : vector<8x16xf32>
    %79 = vector.extract_strided_slice %74 {offsets = [0, 0], sizes = [8, 16], strides = [1, 1]} : vector<8x48xf32> to vector<8x16xf32>
    %80 = arith.mulf %79, %76 : vector<8x16xf32>
    %81 = arith.addf %78, %80 : vector<8x16xf32>
    %82 = vector.extract_strided_slice %74 {offsets = [0, 32], sizes = [8, 16], strides = [1, 1]} : vector<8x48xf32> to vector<8x16xf32>
    %83 = math.tanh %81 : vector<8x16xf32>
    %84 = arith.mulf %82, %83 : vector<8x16xf32>
    %85 = vector.extract_strided_slice %19 {offsets = [24, 0], sizes = [8, 64], strides = [1, 1]} : vector<112x64xf32> to vector<8x64xf32>
    %cst_30 = arith.constant dense<0.000000e+00> : vector<8x64xf32>
    %86 = tpu.matmul %84, %5, %cst_30 {dimension_numbers = #tpu.dot_dimension_numbers<[1], [0], [0], [1], [0, 0, 1, 1], [], []>} : vector<8x16xf32>, vector<16x64xf32>, vector<8x64xf32> -> vector<8x64xf32>
    %87 = arith.addf %85, %86 : vector<8x64xf32>
    %88 = vector.extract_strided_slice %87 {offsets = [0, 0], sizes = [8, 48], strides = [1, 1]} : vector<8x64xf32> to vector<8x48xf32>
    %cst_31 = arith.constant 5.000000e-01 : f32
    %89 = vector.broadcast %cst_31 : f32 to vector<8x48xf32>
    %90 = arith.mulf %89, %88 : vector<8x48xf32>
    %91 = math.tanh %90 : vector<8x48xf32>
    %cst_32 = arith.constant 1.000000e+00 : f32
    %92 = vector.broadcast %cst_32 : f32 to vector<8x48xf32>
    %93 = arith.addf %92, %91 : vector<8x48xf32>
    %cst_33 = arith.constant 5.000000e-01 : f32
    %94 = vector.broadcast %cst_33 : f32 to vector<8x48xf32>
    %95 = arith.mulf %94, %93 : vector<8x48xf32>
    %96 = vector.extract_strided_slice %87 {offsets = [0, 48], sizes = [8, 16], strides = [1, 1]} : vector<8x64xf32> to vector<8x16xf32>
    %97 = math.tanh %96 : vector<8x16xf32>
    %98 = vector.extract_strided_slice %95 {offsets = [0, 16], sizes = [8, 16], strides = [1, 1]} : vector<8x48xf32> to vector<8x16xf32>
    %99 = arith.mulf %98, %81 : vector<8x16xf32>
    %100 = vector.extract_strided_slice %95 {offsets = [0, 0], sizes = [8, 16], strides = [1, 1]} : vector<8x48xf32> to vector<8x16xf32>
    %101 = arith.mulf %100, %97 : vector<8x16xf32>
    %102 = arith.addf %99, %101 : vector<8x16xf32>
    %103 = vector.extract_strided_slice %95 {offsets = [0, 32], sizes = [8, 16], strides = [1, 1]} : vector<8x48xf32> to vector<8x16xf32>
    %104 = math.tanh %102 : vector<8x16xf32>
    %105 = arith.mulf %103, %104 : vector<8x16xf32>
    %106 = vector.extract_strided_slice %19 {offsets = [32, 0], sizes = [8, 64], strides = [1, 1]} : vector<112x64xf32> to vector<8x64xf32>
    %cst_34 = arith.constant dense<0.000000e+00> : vector<8x64xf32>
    %107 = tpu.matmul %105, %5, %cst_34 {dimension_numbers = #tpu.dot_dimension_numbers<[1], [0], [0], [1], [0, 0, 1, 1], [], []>} : vector<8x16xf32>, vector<16x64xf32>, vector<8x64xf32> -> vector<8x64xf32>
    %108 = arith.addf %106, %107 : vector<8x64xf32>
    %109 = vector.extract_strided_slice %108 {offsets = [0, 0], sizes = [8, 48], strides = [1, 1]} : vector<8x64xf32> to vector<8x48xf32>
    %cst_35 = arith.constant 5.000000e-01 : f32
    %110 = vector.broadcast %cst_35 : f32 to vector<8x48xf32>
    %111 = arith.mulf %110, %109 : vector<8x48xf32>
    %112 = math.tanh %111 : vector<8x48xf32>
    %cst_36 = arith.constant 1.000000e+00 : f32
    %113 = vector.broadcast %cst_36 : f32 to vector<8x48xf32>
    %114 = arith.addf %113, %112 : vector<8x48xf32>
    %cst_37 = arith.constant 5.000000e-01 : f32
    %115 = vector.broadcast %cst_37 : f32 to vector<8x48xf32>
    %116 = arith.mulf %115, %114 : vector<8x48xf32>
    %117 = vector.extract_strided_slice %108 {offsets = [0, 48], sizes = [8, 16], strides = [1, 1]} : vector<8x64xf32> to vector<8x16xf32>
    %118 = math.tanh %117 : vector<8x16xf32>
    %119 = vector.extract_strided_slice %116 {offsets = [0, 16], sizes = [8, 16], strides = [1, 1]} : vector<8x48xf32> to vector<8x16xf32>
    %120 = arith.mulf %119, %102 : vector<8x16xf32>
    %121 = vector.extract_strided_slice %116 {offsets = [0, 0], sizes = [8, 16], strides = [1, 1]} : vector<8x48xf32> to vector<8x16xf32>
    %122 = arith.mulf %121, %118 : vector<8x16xf32>
    %123 = arith.addf %120, %122 : vector<8x16xf32>
    %124 = vector.extract_strided_slice %116 {offsets = [0, 32], sizes = [8, 16], strides = [1, 1]} : vector<8x48xf32> to vector<8x16xf32>
    %125 = math.tanh %123 : vector<8x16xf32>
    %126 = arith.mulf %124, %125 : vector<8x16xf32>
    %127 = vector.extract_strided_slice %19 {offsets = [40, 0], sizes = [8, 64], strides = [1, 1]} : vector<112x64xf32> to vector<8x64xf32>
    %cst_38 = arith.constant dense<0.000000e+00> : vector<8x64xf32>
    %128 = tpu.matmul %126, %5, %cst_38 {dimension_numbers = #tpu.dot_dimension_numbers<[1], [0], [0], [1], [0, 0, 1, 1], [], []>} : vector<8x16xf32>, vector<16x64xf32>, vector<8x64xf32> -> vector<8x64xf32>
    %129 = arith.addf %127, %128 : vector<8x64xf32>
    %130 = vector.extract_strided_slice %129 {offsets = [0, 0], sizes = [8, 48], strides = [1, 1]} : vector<8x64xf32> to vector<8x48xf32>
    %cst_39 = arith.constant 5.000000e-01 : f32
    %131 = vector.broadcast %cst_39 : f32 to vector<8x48xf32>
    %132 = arith.mulf %131, %130 : vector<8x48xf32>
    %133 = math.tanh %132 : vector<8x48xf32>
    %cst_40 = arith.constant 1.000000e+00 : f32
    %134 = vector.broadcast %cst_40 : f32 to vector<8x48xf32>
    %135 = arith.addf %134, %133 : vector<8x48xf32>
    %cst_41 = arith.constant 5.000000e-01 : f32
    %136 = vector.broadcast %cst_41 : f32 to vector<8x48xf32>
    %137 = arith.mulf %136, %135 : vector<8x48xf32>
    %138 = vector.extract_strided_slice %129 {offsets = [0, 48], sizes = [8, 16], strides = [1, 1]} : vector<8x64xf32> to vector<8x16xf32>
    %139 = math.tanh %138 : vector<8x16xf32>
    %140 = vector.extract_strided_slice %137 {offsets = [0, 16], sizes = [8, 16], strides = [1, 1]} : vector<8x48xf32> to vector<8x16xf32>
    %141 = arith.mulf %140, %123 : vector<8x16xf32>
    %142 = vector.extract_strided_slice %137 {offsets = [0, 0], sizes = [8, 16], strides = [1, 1]} : vector<8x48xf32> to vector<8x16xf32>
    %143 = arith.mulf %142, %139 : vector<8x16xf32>
    %144 = arith.addf %141, %143 : vector<8x16xf32>
    %145 = vector.extract_strided_slice %137 {offsets = [0, 32], sizes = [8, 16], strides = [1, 1]} : vector<8x48xf32> to vector<8x16xf32>
    %146 = math.tanh %144 : vector<8x16xf32>
    %147 = arith.mulf %145, %146 : vector<8x16xf32>
    %148 = vector.extract_strided_slice %19 {offsets = [48, 0], sizes = [8, 64], strides = [1, 1]} : vector<112x64xf32> to vector<8x64xf32>
    %cst_42 = arith.constant dense<0.000000e+00> : vector<8x64xf32>
    %149 = tpu.matmul %147, %5, %cst_42 {dimension_numbers = #tpu.dot_dimension_numbers<[1], [0], [0], [1], [0, 0, 1, 1], [], []>} : vector<8x16xf32>, vector<16x64xf32>, vector<8x64xf32> -> vector<8x64xf32>
    %150 = arith.addf %148, %149 : vector<8x64xf32>
    %151 = vector.extract_strided_slice %150 {offsets = [0, 0], sizes = [8, 48], strides = [1, 1]} : vector<8x64xf32> to vector<8x48xf32>
    %cst_43 = arith.constant 5.000000e-01 : f32
    %152 = vector.broadcast %cst_43 : f32 to vector<8x48xf32>
    %153 = arith.mulf %152, %151 : vector<8x48xf32>
    %154 = math.tanh %153 : vector<8x48xf32>
    %cst_44 = arith.constant 1.000000e+00 : f32
    %155 = vector.broadcast %cst_44 : f32 to vector<8x48xf32>
    %156 = arith.addf %155, %154 : vector<8x48xf32>
    %cst_45 = arith.constant 5.000000e-01 : f32
    %157 = vector.broadcast %cst_45 : f32 to vector<8x48xf32>
    %158 = arith.mulf %157, %156 : vector<8x48xf32>
    %159 = vector.extract_strided_slice %150 {offsets = [0, 48], sizes = [8, 16], strides = [1, 1]} : vector<8x64xf32> to vector<8x16xf32>
    %160 = math.tanh %159 : vector<8x16xf32>
    %161 = vector.extract_strided_slice %158 {offsets = [0, 16], sizes = [8, 16], strides = [1, 1]} : vector<8x48xf32> to vector<8x16xf32>
    %162 = arith.mulf %161, %144 : vector<8x16xf32>
    %163 = vector.extract_strided_slice %158 {offsets = [0, 0], sizes = [8, 16], strides = [1, 1]} : vector<8x48xf32> to vector<8x16xf32>
    %164 = arith.mulf %163, %160 : vector<8x16xf32>
    %165 = arith.addf %162, %164 : vector<8x16xf32>
    %166 = vector.extract_strided_slice %158 {offsets = [0, 32], sizes = [8, 16], strides = [1, 1]} : vector<8x48xf32> to vector<8x16xf32>
    %167 = math.tanh %165 : vector<8x16xf32>
    %168 = arith.mulf %166, %167 : vector<8x16xf32>
    %169 = vector.extract_strided_slice %19 {offsets = [56, 0], sizes = [8, 64], strides = [1, 1]} : vector<112x64xf32> to vector<8x64xf32>
    %cst_46 = arith.constant dense<0.000000e+00> : vector<8x64xf32>
    %170 = tpu.matmul %168, %5, %cst_46 {dimension_numbers = #tpu.dot_dimension_numbers<[1], [0], [0], [1], [0, 0, 1, 1], [], []>} : vector<8x16xf32>, vector<16x64xf32>, vector<8x64xf32> -> vector<8x64xf32>
    %171 = arith.addf %169, %170 : vector<8x64xf32>
    %172 = vector.extract_strided_slice %171 {offsets = [0, 0], sizes = [8, 48], strides = [1, 1]} : vector<8x64xf32> to vector<8x48xf32>
    %cst_47 = arith.constant 5.000000e-01 : f32
    %173 = vector.broadcast %cst_47 : f32 to vector<8x48xf32>
    %174 = arith.mulf %173, %172 : vector<8x48xf32>
    %175 = math.tanh %174 : vector<8x48xf32>
    %cst_48 = arith.constant 1.000000e+00 : f32
    %176 = vector.broadcast %cst_48 : f32 to vector<8x48xf32>
    %177 = arith.addf %176, %175 : vector<8x48xf32>
    %cst_49 = arith.constant 5.000000e-01 : f32
    %178 = vector.broadcast %cst_49 : f32 to vector<8x48xf32>
    %179 = arith.mulf %178, %177 : vector<8x48xf32>
    %180 = vector.extract_strided_slice %171 {offsets = [0, 48], sizes = [8, 16], strides = [1, 1]} : vector<8x64xf32> to vector<8x16xf32>
    %181 = math.tanh %180 : vector<8x16xf32>
    %182 = vector.extract_strided_slice %179 {offsets = [0, 16], sizes = [8, 16], strides = [1, 1]} : vector<8x48xf32> to vector<8x16xf32>
    %183 = arith.mulf %182, %165 : vector<8x16xf32>
    %184 = vector.extract_strided_slice %179 {offsets = [0, 0], sizes = [8, 16], strides = [1, 1]} : vector<8x48xf32> to vector<8x16xf32>
    %185 = arith.mulf %184, %181 : vector<8x16xf32>
    %186 = arith.addf %183, %185 : vector<8x16xf32>
    %187 = vector.extract_strided_slice %179 {offsets = [0, 32], sizes = [8, 16], strides = [1, 1]} : vector<8x48xf32> to vector<8x16xf32>
    %188 = math.tanh %186 : vector<8x16xf32>
    %189 = arith.mulf %187, %188 : vector<8x16xf32>
    %190 = vector.extract_strided_slice %19 {offsets = [64, 0], sizes = [8, 64], strides = [1, 1]} : vector<112x64xf32> to vector<8x64xf32>
    %cst_50 = arith.constant dense<0.000000e+00> : vector<8x64xf32>
    %191 = tpu.matmul %189, %5, %cst_50 {dimension_numbers = #tpu.dot_dimension_numbers<[1], [0], [0], [1], [0, 0, 1, 1], [], []>} : vector<8x16xf32>, vector<16x64xf32>, vector<8x64xf32> -> vector<8x64xf32>
    %192 = arith.addf %190, %191 : vector<8x64xf32>
    %193 = vector.extract_strided_slice %192 {offsets = [0, 0], sizes = [8, 48], strides = [1, 1]} : vector<8x64xf32> to vector<8x48xf32>
    %cst_51 = arith.constant 5.000000e-01 : f32
    %194 = vector.broadcast %cst_51 : f32 to vector<8x48xf32>
    %195 = arith.mulf %194, %193 : vector<8x48xf32>
    %196 = math.tanh %195 : vector<8x48xf32>
    %cst_52 = arith.constant 1.000000e+00 : f32
    %197 = vector.broadcast %cst_52 : f32 to vector<8x48xf32>
    %198 = arith.addf %197, %196 : vector<8x48xf32>
    %cst_53 = arith.constant 5.000000e-01 : f32
    %199 = vector.broadcast %cst_53 : f32 to vector<8x48xf32>
    %200 = arith.mulf %199, %198 : vector<8x48xf32>
    %201 = vector.extract_strided_slice %192 {offsets = [0, 48], sizes = [8, 16], strides = [1, 1]} : vector<8x64xf32> to vector<8x16xf32>
    %202 = math.tanh %201 : vector<8x16xf32>
    %203 = vector.extract_strided_slice %200 {offsets = [0, 16], sizes = [8, 16], strides = [1, 1]} : vector<8x48xf32> to vector<8x16xf32>
    %204 = arith.mulf %203, %186 : vector<8x16xf32>
    %205 = vector.extract_strided_slice %200 {offsets = [0, 0], sizes = [8, 16], strides = [1, 1]} : vector<8x48xf32> to vector<8x16xf32>
    %206 = arith.mulf %205, %202 : vector<8x16xf32>
    %207 = arith.addf %204, %206 : vector<8x16xf32>
    %208 = vector.extract_strided_slice %200 {offsets = [0, 32], sizes = [8, 16], strides = [1, 1]} : vector<8x48xf32> to vector<8x16xf32>
    %209 = math.tanh %207 : vector<8x16xf32>
    %210 = arith.mulf %208, %209 : vector<8x16xf32>
    %211 = vector.extract_strided_slice %19 {offsets = [72, 0], sizes = [8, 64], strides = [1, 1]} : vector<112x64xf32> to vector<8x64xf32>
    %cst_54 = arith.constant dense<0.000000e+00> : vector<8x64xf32>
    %212 = tpu.matmul %210, %5, %cst_54 {dimension_numbers = #tpu.dot_dimension_numbers<[1], [0], [0], [1], [0, 0, 1, 1], [], []>} : vector<8x16xf32>, vector<16x64xf32>, vector<8x64xf32> -> vector<8x64xf32>
    %213 = arith.addf %211, %212 : vector<8x64xf32>
    %214 = vector.extract_strided_slice %213 {offsets = [0, 0], sizes = [8, 48], strides = [1, 1]} : vector<8x64xf32> to vector<8x48xf32>
    %cst_55 = arith.constant 5.000000e-01 : f32
    %215 = vector.broadcast %cst_55 : f32 to vector<8x48xf32>
    %216 = arith.mulf %215, %214 : vector<8x48xf32>
    %217 = math.tanh %216 : vector<8x48xf32>
    %cst_56 = arith.constant 1.000000e+00 : f32
    %218 = vector.broadcast %cst_56 : f32 to vector<8x48xf32>
    %219 = arith.addf %218, %217 : vector<8x48xf32>
    %cst_57 = arith.constant 5.000000e-01 : f32
    %220 = vector.broadcast %cst_57 : f32 to vector<8x48xf32>
    %221 = arith.mulf %220, %219 : vector<8x48xf32>
    %222 = vector.extract_strided_slice %213 {offsets = [0, 48], sizes = [8, 16], strides = [1, 1]} : vector<8x64xf32> to vector<8x16xf32>
    %223 = math.tanh %222 : vector<8x16xf32>
    %224 = vector.extract_strided_slice %221 {offsets = [0, 16], sizes = [8, 16], strides = [1, 1]} : vector<8x48xf32> to vector<8x16xf32>
    %225 = arith.mulf %224, %207 : vector<8x16xf32>
    %226 = vector.extract_strided_slice %221 {offsets = [0, 0], sizes = [8, 16], strides = [1, 1]} : vector<8x48xf32> to vector<8x16xf32>
    %227 = arith.mulf %226, %223 : vector<8x16xf32>
    %228 = arith.addf %225, %227 : vector<8x16xf32>
    %229 = vector.extract_strided_slice %221 {offsets = [0, 32], sizes = [8, 16], strides = [1, 1]} : vector<8x48xf32> to vector<8x16xf32>
    %230 = math.tanh %228 : vector<8x16xf32>
    %231 = arith.mulf %229, %230 : vector<8x16xf32>
    %232 = vector.extract_strided_slice %19 {offsets = [80, 0], sizes = [8, 64], strides = [1, 1]} : vector<112x64xf32> to vector<8x64xf32>
    %cst_58 = arith.constant dense<0.000000e+00> : vector<8x64xf32>
    %233 = tpu.matmul %231, %5, %cst_58 {dimension_numbers = #tpu.dot_dimension_numbers<[1], [0], [0], [1], [0, 0, 1, 1], [], []>} : vector<8x16xf32>, vector<16x64xf32>, vector<8x64xf32> -> vector<8x64xf32>
    %234 = arith.addf %232, %233 : vector<8x64xf32>
    %235 = vector.extract_strided_slice %234 {offsets = [0, 0], sizes = [8, 48], strides = [1, 1]} : vector<8x64xf32> to vector<8x48xf32>
    %cst_59 = arith.constant 5.000000e-01 : f32
    %236 = vector.broadcast %cst_59 : f32 to vector<8x48xf32>
    %237 = arith.mulf %236, %235 : vector<8x48xf32>
    %238 = math.tanh %237 : vector<8x48xf32>
    %cst_60 = arith.constant 1.000000e+00 : f32
    %239 = vector.broadcast %cst_60 : f32 to vector<8x48xf32>
    %240 = arith.addf %239, %238 : vector<8x48xf32>
    %cst_61 = arith.constant 5.000000e-01 : f32
    %241 = vector.broadcast %cst_61 : f32 to vector<8x48xf32>
    %242 = arith.mulf %241, %240 : vector<8x48xf32>
    %243 = vector.extract_strided_slice %234 {offsets = [0, 48], sizes = [8, 16], strides = [1, 1]} : vector<8x64xf32> to vector<8x16xf32>
    %244 = math.tanh %243 : vector<8x16xf32>
    %245 = vector.extract_strided_slice %242 {offsets = [0, 16], sizes = [8, 16], strides = [1, 1]} : vector<8x48xf32> to vector<8x16xf32>
    %246 = arith.mulf %245, %228 : vector<8x16xf32>
    %247 = vector.extract_strided_slice %242 {offsets = [0, 0], sizes = [8, 16], strides = [1, 1]} : vector<8x48xf32> to vector<8x16xf32>
    %248 = arith.mulf %247, %244 : vector<8x16xf32>
    %249 = arith.addf %246, %248 : vector<8x16xf32>
    %250 = vector.extract_strided_slice %242 {offsets = [0, 32], sizes = [8, 16], strides = [1, 1]} : vector<8x48xf32> to vector<8x16xf32>
    %251 = math.tanh %249 : vector<8x16xf32>
    %252 = arith.mulf %250, %251 : vector<8x16xf32>
    %253 = vector.extract_strided_slice %19 {offsets = [88, 0], sizes = [8, 64], strides = [1, 1]} : vector<112x64xf32> to vector<8x64xf32>
    %cst_62 = arith.constant dense<0.000000e+00> : vector<8x64xf32>
    %254 = tpu.matmul %252, %5, %cst_62 {dimension_numbers = #tpu.dot_dimension_numbers<[1], [0], [0], [1], [0, 0, 1, 1], [], []>} : vector<8x16xf32>, vector<16x64xf32>, vector<8x64xf32> -> vector<8x64xf32>
    %255 = arith.addf %253, %254 : vector<8x64xf32>
    %256 = vector.extract_strided_slice %255 {offsets = [0, 0], sizes = [8, 48], strides = [1, 1]} : vector<8x64xf32> to vector<8x48xf32>
    %cst_63 = arith.constant 5.000000e-01 : f32
    %257 = vector.broadcast %cst_63 : f32 to vector<8x48xf32>
    %258 = arith.mulf %257, %256 : vector<8x48xf32>
    %259 = math.tanh %258 : vector<8x48xf32>
    %cst_64 = arith.constant 1.000000e+00 : f32
    %260 = vector.broadcast %cst_64 : f32 to vector<8x48xf32>
    %261 = arith.addf %260, %259 : vector<8x48xf32>
    %cst_65 = arith.constant 5.000000e-01 : f32
    %262 = vector.broadcast %cst_65 : f32 to vector<8x48xf32>
    %263 = arith.mulf %262, %261 : vector<8x48xf32>
    %264 = vector.extract_strided_slice %255 {offsets = [0, 48], sizes = [8, 16], strides = [1, 1]} : vector<8x64xf32> to vector<8x16xf32>
    %265 = math.tanh %264 : vector<8x16xf32>
    %266 = vector.extract_strided_slice %263 {offsets = [0, 16], sizes = [8, 16], strides = [1, 1]} : vector<8x48xf32> to vector<8x16xf32>
    %267 = arith.mulf %266, %249 : vector<8x16xf32>
    %268 = vector.extract_strided_slice %263 {offsets = [0, 0], sizes = [8, 16], strides = [1, 1]} : vector<8x48xf32> to vector<8x16xf32>
    %269 = arith.mulf %268, %265 : vector<8x16xf32>
    %270 = arith.addf %267, %269 : vector<8x16xf32>
    %271 = vector.extract_strided_slice %263 {offsets = [0, 32], sizes = [8, 16], strides = [1, 1]} : vector<8x48xf32> to vector<8x16xf32>
    %272 = math.tanh %270 : vector<8x16xf32>
    %273 = arith.mulf %271, %272 : vector<8x16xf32>
    %274 = vector.extract_strided_slice %19 {offsets = [96, 0], sizes = [8, 64], strides = [1, 1]} : vector<112x64xf32> to vector<8x64xf32>
    %cst_66 = arith.constant dense<0.000000e+00> : vector<8x64xf32>
    %275 = tpu.matmul %273, %5, %cst_66 {dimension_numbers = #tpu.dot_dimension_numbers<[1], [0], [0], [1], [0, 0, 1, 1], [], []>} : vector<8x16xf32>, vector<16x64xf32>, vector<8x64xf32> -> vector<8x64xf32>
    %276 = arith.addf %274, %275 : vector<8x64xf32>
    %277 = vector.extract_strided_slice %276 {offsets = [0, 0], sizes = [8, 48], strides = [1, 1]} : vector<8x64xf32> to vector<8x48xf32>
    %cst_67 = arith.constant 5.000000e-01 : f32
    %278 = vector.broadcast %cst_67 : f32 to vector<8x48xf32>
    %279 = arith.mulf %278, %277 : vector<8x48xf32>
    %280 = math.tanh %279 : vector<8x48xf32>
    %cst_68 = arith.constant 1.000000e+00 : f32
    %281 = vector.broadcast %cst_68 : f32 to vector<8x48xf32>
    %282 = arith.addf %281, %280 : vector<8x48xf32>
    %cst_69 = arith.constant 5.000000e-01 : f32
    %283 = vector.broadcast %cst_69 : f32 to vector<8x48xf32>
    %284 = arith.mulf %283, %282 : vector<8x48xf32>
    %285 = vector.extract_strided_slice %276 {offsets = [0, 48], sizes = [8, 16], strides = [1, 1]} : vector<8x64xf32> to vector<8x16xf32>
    %286 = math.tanh %285 : vector<8x16xf32>
    %287 = vector.extract_strided_slice %284 {offsets = [0, 16], sizes = [8, 16], strides = [1, 1]} : vector<8x48xf32> to vector<8x16xf32>
    %288 = arith.mulf %287, %270 : vector<8x16xf32>
    %289 = vector.extract_strided_slice %284 {offsets = [0, 0], sizes = [8, 16], strides = [1, 1]} : vector<8x48xf32> to vector<8x16xf32>
    %290 = arith.mulf %289, %286 : vector<8x16xf32>
    %291 = arith.addf %288, %290 : vector<8x16xf32>
    %292 = vector.extract_strided_slice %284 {offsets = [0, 32], sizes = [8, 16], strides = [1, 1]} : vector<8x48xf32> to vector<8x16xf32>
    %293 = math.tanh %291 : vector<8x16xf32>
    %294 = arith.mulf %292, %293 : vector<8x16xf32>
    %295 = vector.extract_strided_slice %19 {offsets = [104, 0], sizes = [8, 64], strides = [1, 1]} : vector<112x64xf32> to vector<8x64xf32>
    %cst_70 = arith.constant dense<0.000000e+00> : vector<8x64xf32>
    %296 = tpu.matmul %294, %5, %cst_70 {dimension_numbers = #tpu.dot_dimension_numbers<[1], [0], [0], [1], [0, 0, 1, 1], [], []>} : vector<8x16xf32>, vector<16x64xf32>, vector<8x64xf32> -> vector<8x64xf32>
    %297 = arith.addf %295, %296 : vector<8x64xf32>
    %298 = vector.extract_strided_slice %297 {offsets = [0, 0], sizes = [8, 48], strides = [1, 1]} : vector<8x64xf32> to vector<8x48xf32>
    %cst_71 = arith.constant 5.000000e-01 : f32
    %299 = vector.broadcast %cst_71 : f32 to vector<8x48xf32>
    %300 = arith.mulf %299, %298 : vector<8x48xf32>
    %301 = math.tanh %300 : vector<8x48xf32>
    %cst_72 = arith.constant 1.000000e+00 : f32
    %302 = vector.broadcast %cst_72 : f32 to vector<8x48xf32>
    %303 = arith.addf %302, %301 : vector<8x48xf32>
    %cst_73 = arith.constant 5.000000e-01 : f32
    %304 = vector.broadcast %cst_73 : f32 to vector<8x48xf32>
    %305 = arith.mulf %304, %303 : vector<8x48xf32>
    %306 = vector.extract_strided_slice %297 {offsets = [0, 48], sizes = [8, 16], strides = [1, 1]} : vector<8x64xf32> to vector<8x16xf32>
    %307 = math.tanh %306 : vector<8x16xf32>
    %308 = vector.extract_strided_slice %305 {offsets = [0, 16], sizes = [8, 16], strides = [1, 1]} : vector<8x48xf32> to vector<8x16xf32>
    %309 = arith.mulf %308, %291 : vector<8x16xf32>
    %310 = vector.extract_strided_slice %305 {offsets = [0, 0], sizes = [8, 16], strides = [1, 1]} : vector<8x48xf32> to vector<8x16xf32>
    %311 = arith.mulf %310, %307 : vector<8x16xf32>
    %312 = arith.addf %309, %311 : vector<8x16xf32>
    %313 = vector.extract_strided_slice %305 {offsets = [0, 32], sizes = [8, 16], strides = [1, 1]} : vector<8x48xf32> to vector<8x16xf32>
    %314 = math.tanh %312 : vector<8x16xf32>
    %315 = arith.mulf %313, %314 : vector<8x16xf32>
    %cst_74 = arith.constant dense<0.000000e+00> : vector<8x16xf32>
    %316 = tpu.matmul %315, %7, %cst_74 {dimension_numbers = #tpu.dot_dimension_numbers<[1], [0], [0], [1], [0, 0, 1, 1], [], []>} : vector<8x16xf32>, vector<16x16xf32>, vector<8x16xf32> -> vector<8x16xf32>
    %317 = vector.broadcast %9 : vector<1x16xf32> to vector<8x16xf32>
    %318 = arith.addf %316, %317 : vector<8x16xf32>
    %cst_75 = arith.constant 0.000000e+00 : f32
    %319 = vector.broadcast %cst_75 : f32 to vector<8x4xf32>
    %cst_76 = arith.constant 0.000000e+00 : f32
    %320 = vector.broadcast %cst_76 : f32 to vector<8x4xf32>
    %cst_77 = arith.constant dense<0.000000e+00> : vector<8x16xf32>
    %321 = tpu.matmul %319, %8, %cst_77 {dimension_numbers = #tpu.dot_dimension_numbers<[1], [0], [0], [1], [0, 0, 1, 1], [], []>} : vector<8x4xf32>, vector<4x16xf32>, vector<8x16xf32> -> vector<8x16xf32>
    %322 = arith.addf %318, %321 : vector<8x16xf32>
    %323 = vector.extract_strided_slice %322 {offsets = [0, 0], sizes = [8, 12], strides = [1, 1]} : vector<8x16xf32> to vector<8x12xf32>
    %cst_78 = arith.constant 5.000000e-01 : f32
    %324 = vector.broadcast %cst_78 : f32 to vector<8x12xf32>
    %325 = arith.mulf %324, %323 : vector<8x12xf32>
    %326 = math.tanh %325 : vector<8x12xf32>
    %cst_79 = arith.constant 1.000000e+00 : f32
    %327 = vector.broadcast %cst_79 : f32 to vector<8x12xf32>
    %328 = arith.addf %327, %326 : vector<8x12xf32>
    %cst_80 = arith.constant 5.000000e-01 : f32
    %329 = vector.broadcast %cst_80 : f32 to vector<8x12xf32>
    %330 = arith.mulf %329, %328 : vector<8x12xf32>
    %331 = vector.extract_strided_slice %322 {offsets = [0, 12], sizes = [8, 4], strides = [1, 1]} : vector<8x16xf32> to vector<8x4xf32>
    %332 = math.tanh %331 : vector<8x4xf32>
    %333 = vector.extract_strided_slice %330 {offsets = [0, 4], sizes = [8, 4], strides = [1, 1]} : vector<8x12xf32> to vector<8x4xf32>
    %334 = arith.mulf %333, %320 : vector<8x4xf32>
    %335 = vector.extract_strided_slice %330 {offsets = [0, 0], sizes = [8, 4], strides = [1, 1]} : vector<8x12xf32> to vector<8x4xf32>
    %336 = arith.mulf %335, %332 : vector<8x4xf32>
    %337 = arith.addf %334, %336 : vector<8x4xf32>
    %338 = vector.extract_strided_slice %330 {offsets = [0, 8], sizes = [8, 4], strides = [1, 1]} : vector<8x12xf32> to vector<8x4xf32>
    %339 = math.tanh %337 : vector<8x4xf32>
    %340 = arith.mulf %338, %339 : vector<8x4xf32>
    %cst_81 = arith.constant dense<0.000000e+00> : vector<8x16xf32>
    %341 = tpu.matmul %340, %8, %cst_81 {dimension_numbers = #tpu.dot_dimension_numbers<[1], [0], [0], [1], [0, 0, 1, 1], [], []>} : vector<8x4xf32>, vector<4x16xf32>, vector<8x16xf32> -> vector<8x16xf32>
    %342 = arith.addf %318, %341 : vector<8x16xf32>
    %343 = vector.extract_strided_slice %342 {offsets = [0, 0], sizes = [8, 12], strides = [1, 1]} : vector<8x16xf32> to vector<8x12xf32>
    %cst_82 = arith.constant 5.000000e-01 : f32
    %344 = vector.broadcast %cst_82 : f32 to vector<8x12xf32>
    %345 = arith.mulf %344, %343 : vector<8x12xf32>
    %346 = math.tanh %345 : vector<8x12xf32>
    %cst_83 = arith.constant 1.000000e+00 : f32
    %347 = vector.broadcast %cst_83 : f32 to vector<8x12xf32>
    %348 = arith.addf %347, %346 : vector<8x12xf32>
    %cst_84 = arith.constant 5.000000e-01 : f32
    %349 = vector.broadcast %cst_84 : f32 to vector<8x12xf32>
    %350 = arith.mulf %349, %348 : vector<8x12xf32>
    %351 = vector.extract_strided_slice %342 {offsets = [0, 12], sizes = [8, 4], strides = [1, 1]} : vector<8x16xf32> to vector<8x4xf32>
    %352 = math.tanh %351 : vector<8x4xf32>
    %353 = vector.extract_strided_slice %350 {offsets = [0, 4], sizes = [8, 4], strides = [1, 1]} : vector<8x12xf32> to vector<8x4xf32>
    %354 = arith.mulf %353, %337 : vector<8x4xf32>
    %355 = vector.extract_strided_slice %350 {offsets = [0, 0], sizes = [8, 4], strides = [1, 1]} : vector<8x12xf32> to vector<8x4xf32>
    %356 = arith.mulf %355, %352 : vector<8x4xf32>
    %357 = arith.addf %354, %356 : vector<8x4xf32>
    %358 = vector.extract_strided_slice %350 {offsets = [0, 8], sizes = [8, 4], strides = [1, 1]} : vector<8x12xf32> to vector<8x4xf32>
    %359 = math.tanh %357 : vector<8x4xf32>
    %360 = arith.mulf %358, %359 : vector<8x4xf32>
    %cst_85 = arith.constant dense<0.000000e+00> : vector<8x16xf32>
    %361 = tpu.matmul %360, %8, %cst_85 {dimension_numbers = #tpu.dot_dimension_numbers<[1], [0], [0], [1], [0, 0, 1, 1], [], []>} : vector<8x4xf32>, vector<4x16xf32>, vector<8x16xf32> -> vector<8x16xf32>
    %362 = arith.addf %318, %361 : vector<8x16xf32>
    %363 = vector.extract_strided_slice %362 {offsets = [0, 0], sizes = [8, 12], strides = [1, 1]} : vector<8x16xf32> to vector<8x12xf32>
    %cst_86 = arith.constant 5.000000e-01 : f32
    %364 = vector.broadcast %cst_86 : f32 to vector<8x12xf32>
    %365 = arith.mulf %364, %363 : vector<8x12xf32>
    %366 = math.tanh %365 : vector<8x12xf32>
    %cst_87 = arith.constant 1.000000e+00 : f32
    %367 = vector.broadcast %cst_87 : f32 to vector<8x12xf32>
    %368 = arith.addf %367, %366 : vector<8x12xf32>
    %cst_88 = arith.constant 5.000000e-01 : f32
    %369 = vector.broadcast %cst_88 : f32 to vector<8x12xf32>
    %370 = arith.mulf %369, %368 : vector<8x12xf32>
    %371 = vector.extract_strided_slice %362 {offsets = [0, 12], sizes = [8, 4], strides = [1, 1]} : vector<8x16xf32> to vector<8x4xf32>
    %372 = math.tanh %371 : vector<8x4xf32>
    %373 = vector.extract_strided_slice %370 {offsets = [0, 4], sizes = [8, 4], strides = [1, 1]} : vector<8x12xf32> to vector<8x4xf32>
    %374 = arith.mulf %373, %357 : vector<8x4xf32>
    %375 = vector.extract_strided_slice %370 {offsets = [0, 0], sizes = [8, 4], strides = [1, 1]} : vector<8x12xf32> to vector<8x4xf32>
    %376 = arith.mulf %375, %372 : vector<8x4xf32>
    %377 = arith.addf %374, %376 : vector<8x4xf32>
    %378 = vector.extract_strided_slice %370 {offsets = [0, 8], sizes = [8, 4], strides = [1, 1]} : vector<8x12xf32> to vector<8x4xf32>
    %379 = math.tanh %377 : vector<8x4xf32>
    %380 = arith.mulf %378, %379 : vector<8x4xf32>
    %cst_89 = arith.constant dense<0.000000e+00> : vector<8x16xf32>
    %381 = tpu.matmul %380, %8, %cst_89 {dimension_numbers = #tpu.dot_dimension_numbers<[1], [0], [0], [1], [0, 0, 1, 1], [], []>} : vector<8x4xf32>, vector<4x16xf32>, vector<8x16xf32> -> vector<8x16xf32>
    %382 = arith.addf %318, %381 : vector<8x16xf32>
    %383 = vector.extract_strided_slice %382 {offsets = [0, 0], sizes = [8, 12], strides = [1, 1]} : vector<8x16xf32> to vector<8x12xf32>
    %cst_90 = arith.constant 5.000000e-01 : f32
    %384 = vector.broadcast %cst_90 : f32 to vector<8x12xf32>
    %385 = arith.mulf %384, %383 : vector<8x12xf32>
    %386 = math.tanh %385 : vector<8x12xf32>
    %cst_91 = arith.constant 1.000000e+00 : f32
    %387 = vector.broadcast %cst_91 : f32 to vector<8x12xf32>
    %388 = arith.addf %387, %386 : vector<8x12xf32>
    %cst_92 = arith.constant 5.000000e-01 : f32
    %389 = vector.broadcast %cst_92 : f32 to vector<8x12xf32>
    %390 = arith.mulf %389, %388 : vector<8x12xf32>
    %391 = vector.extract_strided_slice %382 {offsets = [0, 12], sizes = [8, 4], strides = [1, 1]} : vector<8x16xf32> to vector<8x4xf32>
    %392 = math.tanh %391 : vector<8x4xf32>
    %393 = vector.extract_strided_slice %390 {offsets = [0, 4], sizes = [8, 4], strides = [1, 1]} : vector<8x12xf32> to vector<8x4xf32>
    %394 = arith.mulf %393, %377 : vector<8x4xf32>
    %395 = vector.extract_strided_slice %390 {offsets = [0, 0], sizes = [8, 4], strides = [1, 1]} : vector<8x12xf32> to vector<8x4xf32>
    %396 = arith.mulf %395, %392 : vector<8x4xf32>
    %397 = arith.addf %394, %396 : vector<8x4xf32>
    %398 = vector.extract_strided_slice %390 {offsets = [0, 8], sizes = [8, 4], strides = [1, 1]} : vector<8x12xf32> to vector<8x4xf32>
    %399 = math.tanh %397 : vector<8x4xf32>
    %400 = arith.mulf %398, %399 : vector<8x4xf32>
    %cst_93 = arith.constant dense<0.000000e+00> : vector<8x16xf32>
    %401 = tpu.matmul %400, %8, %cst_93 {dimension_numbers = #tpu.dot_dimension_numbers<[1], [0], [0], [1], [0, 0, 1, 1], [], []>} : vector<8x4xf32>, vector<4x16xf32>, vector<8x16xf32> -> vector<8x16xf32>
    %402 = arith.addf %318, %401 : vector<8x16xf32>
    %403 = vector.extract_strided_slice %402 {offsets = [0, 0], sizes = [8, 12], strides = [1, 1]} : vector<8x16xf32> to vector<8x12xf32>
    %cst_94 = arith.constant 5.000000e-01 : f32
    %404 = vector.broadcast %cst_94 : f32 to vector<8x12xf32>
    %405 = arith.mulf %404, %403 : vector<8x12xf32>
    %406 = math.tanh %405 : vector<8x12xf32>
    %cst_95 = arith.constant 1.000000e+00 : f32
    %407 = vector.broadcast %cst_95 : f32 to vector<8x12xf32>
    %408 = arith.addf %407, %406 : vector<8x12xf32>
    %cst_96 = arith.constant 5.000000e-01 : f32
    %409 = vector.broadcast %cst_96 : f32 to vector<8x12xf32>
    %410 = arith.mulf %409, %408 : vector<8x12xf32>
    %411 = vector.extract_strided_slice %402 {offsets = [0, 12], sizes = [8, 4], strides = [1, 1]} : vector<8x16xf32> to vector<8x4xf32>
    %412 = math.tanh %411 : vector<8x4xf32>
    %413 = vector.extract_strided_slice %410 {offsets = [0, 4], sizes = [8, 4], strides = [1, 1]} : vector<8x12xf32> to vector<8x4xf32>
    %414 = arith.mulf %413, %397 : vector<8x4xf32>
    %415 = vector.extract_strided_slice %410 {offsets = [0, 0], sizes = [8, 4], strides = [1, 1]} : vector<8x12xf32> to vector<8x4xf32>
    %416 = arith.mulf %415, %412 : vector<8x4xf32>
    %417 = arith.addf %414, %416 : vector<8x4xf32>
    %418 = vector.extract_strided_slice %410 {offsets = [0, 8], sizes = [8, 4], strides = [1, 1]} : vector<8x12xf32> to vector<8x4xf32>
    %419 = math.tanh %417 : vector<8x4xf32>
    %420 = arith.mulf %418, %419 : vector<8x4xf32>
    %cst_97 = arith.constant dense<0.000000e+00> : vector<8x16xf32>
    %421 = tpu.matmul %420, %8, %cst_97 {dimension_numbers = #tpu.dot_dimension_numbers<[1], [0], [0], [1], [0, 0, 1, 1], [], []>} : vector<8x4xf32>, vector<4x16xf32>, vector<8x16xf32> -> vector<8x16xf32>
    %422 = arith.addf %318, %421 : vector<8x16xf32>
    %423 = vector.extract_strided_slice %422 {offsets = [0, 0], sizes = [8, 12], strides = [1, 1]} : vector<8x16xf32> to vector<8x12xf32>
    %cst_98 = arith.constant 5.000000e-01 : f32
    %424 = vector.broadcast %cst_98 : f32 to vector<8x12xf32>
    %425 = arith.mulf %424, %423 : vector<8x12xf32>
    %426 = math.tanh %425 : vector<8x12xf32>
    %cst_99 = arith.constant 1.000000e+00 : f32
    %427 = vector.broadcast %cst_99 : f32 to vector<8x12xf32>
    %428 = arith.addf %427, %426 : vector<8x12xf32>
    %cst_100 = arith.constant 5.000000e-01 : f32
    %429 = vector.broadcast %cst_100 : f32 to vector<8x12xf32>
    %430 = arith.mulf %429, %428 : vector<8x12xf32>
    %431 = vector.extract_strided_slice %422 {offsets = [0, 12], sizes = [8, 4], strides = [1, 1]} : vector<8x16xf32> to vector<8x4xf32>
    %432 = math.tanh %431 : vector<8x4xf32>
    %433 = vector.extract_strided_slice %430 {offsets = [0, 4], sizes = [8, 4], strides = [1, 1]} : vector<8x12xf32> to vector<8x4xf32>
    %434 = arith.mulf %433, %417 : vector<8x4xf32>
    %435 = vector.extract_strided_slice %430 {offsets = [0, 0], sizes = [8, 4], strides = [1, 1]} : vector<8x12xf32> to vector<8x4xf32>
    %436 = arith.mulf %435, %432 : vector<8x4xf32>
    %437 = arith.addf %434, %436 : vector<8x4xf32>
    %438 = vector.extract_strided_slice %430 {offsets = [0, 8], sizes = [8, 4], strides = [1, 1]} : vector<8x12xf32> to vector<8x4xf32>
    %439 = math.tanh %437 : vector<8x4xf32>
    %440 = arith.mulf %438, %439 : vector<8x4xf32>
    %441 = tpu.concatenate %340, %360, %380, %400, %420, %440 in 1 : vector<8x4xf32>, vector<8x4xf32>, vector<8x4xf32>, vector<8x4xf32>, vector<8x4xf32>, vector<8x4xf32> -> vector<8x24xf32>
    %cst_101 = arith.constant dense<0.000000e+00> : vector<8x24xf32>
    %442 = tpu.matmul %1, %10, %cst_101 {dimension_numbers = #tpu.dot_dimension_numbers<[1], [0], [0], [1], [0, 0, 1, 1], [], []>} : vector<8x20xf32>, vector<20x24xf32>, vector<8x24xf32> -> vector<8x24xf32>
    %443 = vector.broadcast %11 : vector<1x24xf32> to vector<8x24xf32>
    %444 = arith.addf %442, %443 : vector<8x24xf32>
    %445 = arith.addf %441, %444 : vector<8x24xf32>
    %cst_102 = arith.constant 5.000000e-01 : f32
    %446 = vector.broadcast %cst_102 : f32 to vector<8x24xf32>
    %447 = arith.mulf %446, %445 : vector<8x24xf32>
    %448 = math.tanh %447 : vector<8x24xf32>
    %cst_103 = arith.constant 1.000000e+00 : f32
    %449 = vector.broadcast %cst_103 : f32 to vector<8x24xf32>
    %450 = arith.addf %449, %448 : vector<8x24xf32>
    %cst_104 = arith.constant 5.000000e-01 : f32
    %451 = vector.broadcast %cst_104 : f32 to vector<8x24xf32>
    %452 = arith.mulf %451, %450 : vector<8x24xf32>
    %c0_105 = arith.constant 0 : index
    %c0_106 = arith.constant 0 : index
    %453 = vector.load %arg2[%c0_105, %c0_106] : memref<8x24xf32, #tpu.memory_space<vmem>>, vector<8x24xf32>
    tpu.vector_store %arg2[%c0_105, %c0_106], %452 {strides = array<i32>} : memref<8x24xf32, #tpu.memory_space<vmem>>, vector<8x24xf32>,
    return
  }
}

</mosaic_0001>

<bundles_post_ra>
// kernel: squeeze.1
= control target key start
LH: loop header
LB: loop body
LE: loop exit
PB: predicated region body
PF: predicated region fallthrough
CT: control target
= control target key end

     0   :  { %vm17_vm0 = vcmask 64512   ;;  %s62_s0 = inlined_call_operand.vmem [shape: f32[8,1,3,4], index: 0, kind: input, shape index: {}]   ;;  %s63_s1 = inlined_call_operand.vmem [shape: f32[8,12], index: 1, kind: output, shape index: {}]  }
   0x1   :  { %v30_v0 = vld [vmem:[%s62_s0 + $0x8] sm:$0xf]  ;;  %v31_v1 = vld [vmem:[%s62_s0 + $0x4] sm:$0xf]  ;;  %v14_v2 = vld [vmem:[%s62_s0] sm:$0xf] }
   0x2   :  { %9 = vst [vmem:[#allocation0] sm:$0xf] %v30_v0  ;;  %13 = vst [vmem:[#allocation0 + $0x10] sm:$0xf] %v31_v1 }
   0x3   :  { %15 = vst [vmem:[#allocation0 + $0x8] sm:$0xf] %v14_v2 }
   0x9   :  { %v20_v4 = vld [vmem:[#allocation0 + $0x10] sm:$0xf]   ;;  %v25_v5 = vld [vmem:[#allocation0] sm:$0xf]  }
   0xa   :  { %v16_v3 = vld [vmem:[#allocation0 + $0x8] sm:$0xf]   ;;  %32 = vst.msk [vmem:[%s63_s1 + $0x4] sm:$0xf] %vm17_vm0, %v20_v4   ;;  %33 = vst.msk [vmem:[%s63_s1 + $0x8] sm:$0xf] %vm17_vm0, %v25_v5  }
   0xb   :  { %18 = vst.msk [vmem:[%s63_s1] sm:$0xf] %vm17_vm0, %v16_v3  }

// kernel: tile.8
= control target key start
LH: loop header
LB: loop body
LE: loop exit
PB: predicated region body
PF: predicated region fallthrough
CT: control target
= control target key end

     0   :  { %s22_s0 = inlined_call_operand.vmem [shape: f32[6], index: 0, kind: input, shape index: {}]   ;;  %s23_s1 = inlined_call_operand.vmem [shape: f32[4,6], index: 1, kind: output, shape index: {}]  }
   0x1   :  { %v4_v0 = vld [vmem:[%s22_s0] ss:$0 sm:$0xff] }
   0x2   :  { %5 = vst [vmem:[%s23_s1] sm:$0xf] %v4_v0 }

// kernel: multilstnet_forward.1
= control target key start
LH: loop header
LB: loop body
LE: loop exit
PB: predicated region body
PF: predicated region fallthrough
CT: control target
= control target key end

     0   :  { %vm88_vm0 = vcmask 1043456   ;;  %vm45_vm1 = vcmask 97280   ;;  %v3050_v17 = vmov 0.0   ;;  %vm3051_vm2 = vmmov 0   ;;  %s3052_s23 = smov 80   ;;  %s3053_s24 = smov 16   ;;  %s3496_s1 = inlined_call_operand.vmem [shape: f32[120,64], index: 1, kind: input, shape index: {}]   ;;  %s3497_s0 = inlined_call_operand.vmem [shape: f32[120,20], index: 0, kind: input, shape index: {}]   ;;  %s3498_s2 = inlined_call_operand.vmem [shape: f32[8,24], index: 2, kind: output, shape index: {}]  }
   0x1   :  { %v27_v0 = vld [vmem:[%s3496_s1 + $0x8] sm:$0xf]  ;;  %v26_v1 = vld [vmem:[%s3496_s1] sm:$0xff]  ;;  %v13_v4 = vld [vmem:[%s3497_s0 + $0x10] sm:$0xff]  ;;  %vm245_vm3 = vcmask 64512   ;;  %s3054_s25 = smov 96  }
   0x2   :  { %v11_v2 = vld [vmem:[%s3497_s0] sm:$0xff]  ;;  %2725 = vmatprep.subr.msk.mxu0 %vm88_vm0, %v27_v0  ;;  %v12_v3 = vld [vmem:[%s3497_s0 + $0x8] sm:$0xff]  ;;  %v14_v5 = vld [vmem:[%s3497_s0 + $0x18] sm:$0xff]  ;;  %vm423_vm4 = vcmask 130048   ;;  %s3055_s6 = smov 116   ;;  %s3056_s7 = smov 4  }
   0x3   :  { %2729 = vmatprep.mubr.msk.f32.mxu0 %vm45_vm1, %v11_v2  ;;  %2726 = vmatpush3.msk.msra.mxu0 %vm88_vm0, %v27_v0  ;;  %v15_v6 = vld [vmem:[%s3497_s0 + $0x20] sm:$0xff]  ;;  %v16_v7 = vld [vmem:[%s3497_s0 + $0x28] sm:$0xff]  ;;  %v17_v8 = vld [vmem:[%s3497_s0 + $0x30] sm:$0xff]  ;;  %s3057_s8 = smov 120   ;;  %vm1873_vm5 = vcmask 31744   ;;  %s3058_s9 = smov 124  }
   0x4   :  { %2727 = vmatprep.subr.mxu0 %v26_v1  ;;  %v18_v9 = vld [vmem:[%s3497_s0 + $0x38] sm:$0xff]  ;;  %v19_v10 = vld [vmem:[%s3497_s0 + $0x40] sm:$0xff]  ;;  %v20_v11 = vld [vmem:[%s3497_s0 + $0x48] sm:$0xff]  ;;  %s3059_s14 = smov 8   ;;  %vm2480_vm6 = vcmask 162816   ;;  %vm2567_vm7 = vcmask 195584  }
   0x5   :  { %2728 = vmatpush3.msra.mxu0 %v26_v1  ;;  %v21_v12 = vld [vmem:[%s3497_s0 + $0x50] sm:$0xff]  ;;  %v22_v13 = vld [vmem:[%s3497_s0 + $0x58] sm:$0xff]  ;;  %v23_v14 = vld [vmem:[%s3497_s0 + $0x60] sm:$0xff] }
   0x6   :  { %2730 = vmatmul.mubr.msk.f32.vlgmr.msra.gmra.mxu0 %vm45_vm1, %v12_v3  ;;  %v24_v15 = vld [vmem:[%s3497_s0 + $0x68] sm:$0xff]  ;;  %v29_v16 = vld [vmem:[%s3496_s1 + $0x18] sm:$0xff]  ;;  %2780 = vmatprep.subr.mxu0 %v3050_v17  ;;  %v3155_v19 = vld [vmem:[%s3496_s1 + $0x20] sm:$0xff] }
   0x7   :  { %2732 = vmatprep.mubr.msk.f32.mxu0 %vm45_vm1, %v13_v4  ;;  %2750 = vmatprep.subr.mxu1 %v29_v16  ;;  %v3148_v18 = vld [vmem:[%s3496_s1 + $0x28] sm:$0xff]  ;;  %v2573_v20 = vld [vmem:[%s3496_s1 + $0x10] ss:$0 sm:$0xff] }
   0x8   :  { %2751 = vmatpush3.msra.mxu1 %v29_v16  ;;  %2781 = vmatpush3.msra.mxu0 %v3148_v18  ;;  %v2589_v63 = vld [vmem:[%s3496_s1 + $0x30] ss:$0 sm:$0xff] }
   0x9   :  { %2773 = vmatprep.subr.mxu1 %v3050_v17  ;;  %2782 = vmatprep.subr.mxu0 %v3050_v17 }
   0xa   :  { %2733 = vmatmul.mubr.msk.f32.gmra.mxu0 %vm45_vm1, %v14_v5 }
   0xb   :  { %2735 = vmatprep.mubr.msk.f32.mxu0 %vm45_vm1, %v15_v6  ;;  %2783 = vmatpush3.msra.mxu0 %v3155_v19 }
   0xc   :  { %2794 = vmatprep.subr.mxu0 %v3050_v17 }
   0xe   :  { %2736 = vmatmul.mubr.msk.f32.gmra.mxu0 %vm45_vm1, %v16_v7 }
   0xf   :  { %2738 = vmatprep.mubr.msk.f32.mxu0 %vm45_vm1, %v17_v8 }
  0x12   :  { %2739 = vmatmul.mubr.msk.f32.gmra.mxu0 %vm45_vm1, %v18_v9 }
  0x13   :  { %2741 = vmatprep.mubr.msk.f32.mxu0 %vm45_vm1, %v19_v10 }
  0x16   :  { %2742 = vmatmul.mubr.msk.f32.gmra.mxu0 %vm45_vm1, %v20_v11 }
  0x17   :  { %2744 = vmatprep.mubr.msk.f32.mxu0 %vm45_vm1, %v21_v12 }
  0x1a   :  { %2745 = vmatmul.mubr.msk.f32.gmra.mxu0 %vm45_vm1, %v22_v13 }
  0x1b   :  { %2747 = vmatprep.mubr.msk.f32.mxu0 %vm45_vm1, %v23_v14 }
  0x1e   :  { %2748 = vmatmul.mubr.msk.f32.gmra.mxu0 %vm45_vm1, %v24_v15 }
  0x1f   :  { %2784 = vmatprep.mubr.msk.f32.mxu0 %vm3051_vm2, %v3050_v17 }
  0xc6   :  { %v2731_v21 = vpop.f32.mrf.mxu0 }
  0xc7   :  { %v164_v22 = vadd.f32 %v2731_v21, %v2573_v20 }
  0xc8   :  { %v158_v23 = vpop.f32.mrf.mxu0 }
  0xc9   :  { %v159_v24 = vadd.f32 %v2573_v20, %v158_v23  ;;  %v228_v27 = vmax.f32 %v164_v22, 0.0 }
  0xca   :  { %v2734_v25 = vpop.f32.mrf.mxu0 }
  0xcb   :  { %v227_v26 = vmax.f32 %v159_v24, 0.0  ;;  %v174_v28 = vadd.f32 %v2734_v25, %v2573_v20 }
  0xcc   :  { %v168_v29 = vpop.f32.mrf.mxu0 }
  0xcd   :  { %v169_v30 = vadd.f32 %v2573_v20, %v168_v29  ;;  %2752 = vmatprep.mubr.msk.f32.mxu1 %vm245_vm3, %v227_v26  ;;  %v230_v33 = vmax.f32 %v174_v28, 0.0 }
  0xce   :  { %v2737_v31 = vpop.f32.mrf.mxu0  ;;  %2753 = vmatmul.mubr.msk.f32.vlgmr.msra.gmra.mxu1 %vm245_vm3, %v228_v27 }
  0xcf   :  { %v229_v32 = vmax.f32 %v169_v30, 0.0  ;;  %2774 = vmatpush3.msra.mxu1 %v3148_v18  ;;  %v184_v34 = vadd.f32 %v2737_v31, %v2573_v20 }
  0xd0   :  { %v178_v35 = vpop.f32.mrf.mxu0  ;;  %2775 = vmatprep.subr.mxu1 %v3050_v17 }
  0xd1   :  { %v179_v36 = vadd.f32 %v2573_v20, %v178_v35  ;;  %2755 = vmatprep.mubr.msk.f32.mxu1 %vm245_vm3, %v229_v32  ;;  %2776 = vmatpush3.msra.mxu1 %v3155_v19  ;;  %v232_v39 = vmax.f32 %v184_v34, 0.0 }
  0xd2   :  { %v2740_v37 = vpop.f32.mrf.mxu0  ;;  %2756 = vmatmul.mubr.msk.f32.gmra.mxu1 %vm245_vm3, %v230_v33  ;;  %2787 = vmatprep.subr.mxu1 %v3050_v17 }
  0xd3   :  { %v231_v38 = vmax.f32 %v179_v36, 0.0  ;;  %v194_v40 = vadd.f32 %v2740_v37, %v2573_v20 }
  0xd4   :  { %v188_v41 = vpop.f32.mrf.mxu0 }
  0xd5   :  { %v189_v42 = vadd.f32 %v2573_v20, %v188_v41  ;;  %2758 = vmatprep.mubr.msk.f32.mxu1 %vm245_vm3, %v231_v38  ;;  %v234_v45 = vmax.f32 %v194_v40, 0.0 }
  0xd6   :  { %v2743_v43 = vpop.f32.mrf.mxu0  ;;  %2759 = vmatmul.mubr.msk.f32.gmra.mxu1 %vm245_vm3, %v232_v39 }
  0xd7   :  { %v233_v44 = vmax.f32 %v189_v42, 0.0  ;;  %v204_v46 = vadd.f32 %v2743_v43, %v2573_v20 }
  0xd8   :  { %v198_v47 = vpop.f32.mrf.mxu0 }
  0xd9   :  { %v199_v48 = vadd.f32 %v2573_v20, %v198_v47  ;;  %2761 = vmatprep.mubr.msk.f32.mxu1 %vm245_vm3, %v233_v44  ;;  %v236_v51 = vmax.f32 %v204_v46, 0.0 }
  0xda   :  { %v2746_v49 = vpop.f32.mrf.mxu0  ;;  %2762 = vmatmul.mubr.msk.f32.gmra.mxu1 %vm245_vm3, %v234_v45 }
  0xdb   :  { %v235_v50 = vmax.f32 %v199_v48, 0.0  ;;  %v214_v52 = vadd.f32 %v2746_v49, %v2573_v20 }
  0xdc   :  { %v208_v53 = vpop.f32.mrf.mxu0 }
  0xdd   :  { %v209_v54 = vadd.f32 %v2573_v20, %v208_v53  ;;  %2764 = vmatprep.mubr.msk.f32.mxu1 %vm245_vm3, %v235_v50  ;;  %v238_v57 = vmax.f32 %v214_v52, 0.0 }
  0xde   :  { %v2749_v55 = vpop.f32.mrf.mxu0  ;;  %2765 = vmatmul.mubr.msk.f32.gmra.mxu1 %vm245_vm3, %v236_v51 }
  0xdf   :  { %v237_v56 = vmax.f32 %v209_v54, 0.0  ;;  %v224_v58 = vadd.f32 %v2749_v55, %v2573_v20 }
  0xe0   :  { %v218_v59 = vpop.f32.mrf.mxu0 }
  0xe1   :  { %v219_v60 = vadd.f32 %v2573_v20, %v218_v59  ;;  %2767 = vmatprep.mubr.msk.f32.mxu1 %vm245_vm3, %v237_v56  ;;  %v240_v62 = vmax.f32 %v224_v58, 0.0 }
  0xe2   :  { %2768 = vmatmul.mubr.msk.f32.gmra.mxu1 %vm245_vm3, %v238_v57 }
  0xe3   :  { %v239_v61 = vmax.f32 %v219_v60, 0.0 }
  0xe5   :  { %2770 = vmatprep.mubr.msk.f32.mxu1 %vm245_vm3, %v239_v61 }
  0xe6   :  { %2771 = vmatmul.mubr.msk.f32.gmra.mxu1 %vm245_vm3, %v240_v62 }
  0xe7   :  { %2777 = vmatprep.mubr.msk.f32.mxu1 %vm3051_vm2, %v3050_v17 }
  0xea   :  { %2778 = vmatmul.mubr.f32.vlgmr.msra.gmra.mxu1 %v3050_v17 }
  0xeb   :  { %2788 = vmatpush3.msra.mxu1 %v3148_v18  ;;  %2791 = vmatprep.mubr.msk.f32.mxu1 %vm3051_vm2, %v3050_v17 }
  0xec   :  { %2789 = vmatprep.subr.mxu1 %v3050_v17 }
  0xed   :  { %2790 = vmatpush3.msra.mxu1 %v3155_v19 }
  0xee   :  { %2801 = vmatprep.subr.mxu1 %v3050_v17 }
 0x18e   :  { %v2754_v0 = vpop.f32.mrf.mxu1 }
 0x18f   :  { %v360_v1 = vadd.f32 %v2754_v0, %v2589_v63 }
 0x190   :  { %v354_v2 = vpop.f32.mrf.mxu1 }
 0x191   :  { %v355_v29 = vadd.f32 %v2589_v63, %v354_v2 }
 0x192   :  { %v2757_v3 = vpop.f32.mrf.mxu1 }
 0x193   :  { %v3194_v4 = vadd.f32 %v2757_v3, %v2589_v63 }
 0x194   :  { %v364_v5 = vpop.f32.mrf.mxu1 }
 0x195   :  { %v3196_v6 = vadd.f32 %v2589_v63, %v364_v5 }
 0x196   :  { %v2760_v7 = vpop.f32.mrf.mxu1 }
 0x197   :  { %v3198_v8 = vadd.f32 %v2760_v7, %v2589_v63 }
 0x198   :  { %v374_v9 = vpop.f32.mrf.mxu1 }
 0x199   :  { %v3200_v10 = vadd.f32 %v2589_v63, %v374_v9 }
 0x19a   :  { %v2763_v11 = vpop.f32.mrf.mxu1 }
 0x19b   :  { %v3202_v12 = vadd.f32 %v2763_v11, %v2589_v63 }
 0x19c   :  { %v384_v13 = vpop.f32.mrf.mxu1 }
 0x19d   :  { %v3204_v14 = vadd.f32 %v2589_v63, %v384_v13 }
 0x19e   :  { %v2766_v15 = vpop.f32.mrf.mxu1 }
 0x19f   :  { %v3206_v16 = vadd.f32 %v2766_v15, %v2589_v63 }
 0x1a0   :  { %v394_v20 = vpop.f32.mrf.mxu1 }
 0x1a1   :  { %v3208_v21 = vadd.f32 %v2589_v63, %v394_v20 }
 0x1a2   :  { %v2769_v22 = vpop.f32.mrf.mxu1 }
 0x1a3   :  { %v3210_v23 = vadd.f32 %v2769_v22, %v2589_v63 }
 0x1a4   :  { %v404_v24 = vpop.f32.mrf.mxu1 }
 0x1a5   :  { %v3212_v25 = vadd.f32 %v2589_v63, %v404_v24 }
 0x1a6   :  { %v2772_v26 = vpop.f32.mrf.mxu1 }
 0x1a7   :  { %v3214_v27 = vadd.f32 %v2772_v26, %v2589_v63 }
 0x1a8   :  { %v414_v28 = vpop.f32.mrf.mxu1 }
 0x1a9   :  { %v3216_v30 = vadd.f32 %v2589_v63, %v414_v28 }
 0x1aa   :  { %v493_v31 = vpop.f32.mrf.mxu1 }
 0x1ab   :  { %v497_v32 = vadd.f32 %v493_v31, %v355_v29 }
 0x1ac   :  { %v2779_v33 = vpop.f32.mrf.mxu1 }
 0x1ad   :  { %2928 = vtanh.f32 %v497_v32  ;;  %v498_v35 = vmul.f32 0.5, %v497_v32 }
 0x1af   :  { %2930 = vtanh.f32 %v498_v35 }
 0x1ba   :  { %v2929_v34 = vpop.eup %2928 }
 0x1bb   :  { %505 = vrot.lane.b32.xlu0 %v2929_v34, %s3052_s23 }
 0x1bc   :  { %v2931_v36 = vpop.eup %2930 }
 0x1bd   :  { %v500_v37 = vadd.f32 1.0, %v2931_v36 }
 0x1bf   :  { %v501_v38 = vmul.f32 0.5, %v500_v37 }
 0x1c1   :  { %v503_v41 = vmul.f32 0.0, %v501_v38 }
 0x22d   :  { %v506_v39 = vpop.permute.xlu0 %505 }
 0x22e   :  { %v508_v40 = vmul.f32 %v506_v39, %v501_v38 }
 0x230   :  { %510 = vrot.lane.b32.xlu0 %v508_v40, %s3053_s24 }
 0x2a2   :  { %v511_v42 = vpop.permute.xlu0 %510 }
 0x2a3   :  { %v513_v43 = vadd.f32 %v511_v42, %v503_v41 }
 0x2a5   :  { %2932 = vtanh.f32 %v513_v43 }
 0x2b2   :  { %v2933_v44 = vpop.eup %2932 }
 0x2b3   :  { %516 = vrot.lane.b32.xlu1 %v2933_v44, %s3053_s24 }
 0x325   :  { %v517_v45 = vpop.permute.xlu1 %516 }
 0x326   :  { %v519_v46 = vmul.f32 %v517_v45, %v501_v38 }
 0x328   :  { %521 = vrot.lane.b32.xlu1 %v519_v46, %s3054_s25 }
 0x39a   :  { %v522_v47 = vpop.permute.xlu1 %521 }
 0x39b   :  { %2785 = vmatmul.mubr.msk.f32.vlgmr.msra.gmra.mxu0 %vm423_vm4, %v522_v47 }
 0x39c   :  { %2795 = vmatpush3.msra.mxu0 %v3148_v18  ;;  %2798 = vmatprep.mubr.msk.f32.mxu0 %vm3051_vm2, %v3050_v17 }
 0x39d   :  { %2796 = vmatprep.subr.mxu0 %v3050_v17 }
 0x39e   :  { %2797 = vmatpush3.msra.mxu0 %v3155_v19 }
 0x39f   :  { %2808 = vmatprep.subr.mxu0 %v3050_v17 }
 0x45b   :  { %v591_v48 = vpop.f32.mrf.mxu0 }
 0x45c   :  { %v595_v49 = vadd.f32 %v591_v48, %v360_v1 }
 0x45d   :  { %v2786_v50 = vpop.f32.mrf.mxu0 }
 0x45e   :  { %2934 = vtanh.f32 %v595_v49  ;;  %v596_v52 = vmul.f32 0.5, %v595_v49 }
 0x460   :  { %2936 = vtanh.f32 %v596_v52 }
 0x46b   :  { %v2935_v51 = vpop.eup %2934 }
 0x46c   :  { %603 = vrot.lane.b32.xlu0 %v2935_v51, %s3052_s23 }
 0x46d   :  { %v2937_v53 = vpop.eup %2936 }
 0x46e   :  { %v598_v54 = vadd.f32 1.0, %v2937_v53 }
 0x470   :  { %v599_v55 = vmul.f32 0.5, %v598_v54 }
 0x472   :  { %v601_v58 = vmul.f32 %v599_v55, %v513_v43 }
 0x4de   :  { %v604_v56 = vpop.permute.xlu0 %603 }
 0x4df   :  { %v606_v57 = vmul.f32 %v604_v56, %v599_v55 }
 0x4e1   :  { %608 = vrot.lane.b32.xlu1 %v606_v57, %s3053_s24 }
 0x553   :  { %v609_v59 = vpop.permute.xlu1 %608 }
 0x554   :  { %v611_v60 = vadd.f32 %v609_v59, %v601_v58 }
 0x556   :  { %2938 = vtanh.f32 %v611_v60 }
 0x563   :  { %v2939_v61 = vpop.eup %2938 }
 0x564   :  { %614 = vrot.lane.b32.xlu0 %v2939_v61, %s3053_s24 }
 0x5d6   :  { %v615_v62 = vpop.permute.xlu0 %614 }
 0x5d7   :  { %v617_v63 = vmul.f32 %v615_v62, %v599_v55 }
 0x5d9   :  { %619 = vrot.lane.b32.xlu1 %v617_v63, %s3054_s25 }
 0x64b   :  { %v620_v0 = vpop.permute.xlu1 %619 }
 0x64c   :  { %2792 = vmatmul.mubr.msk.f32.vlgmr.msra.gmra.mxu1 %vm423_vm4, %v620_v0 }
 0x64d   :  { %2802 = vmatpush3.msra.mxu1 %v3148_v18  ;;  %2805 = vmatprep.mubr.msk.f32.mxu1 %vm3051_vm2, %v3050_v17 }
 0x64e   :  { %2803 = vmatprep.subr.mxu1 %v3050_v17 }
 0x64f   :  { %2804 = vmatpush3.msra.mxu1 %v3155_v19 }
 0x650   :  { %2815 = vmatprep.subr.mxu1 %v3050_v17 }
 0x70c   :  { %v689_v1 = vpop.f32.mrf.mxu1 }
 0x70d   :  { %v693_v2 = vadd.f32 %v689_v1, %v3196_v6 }
 0x70e   :  { %v2793_v3 = vpop.f32.mrf.mxu1 }
 0x70f   :  { %2940 = vtanh.f32 %v693_v2  ;;  %v694_v7 = vmul.f32 0.5, %v693_v2 }
 0x711   :  { %2942 = vtanh.f32 %v694_v7 }
 0x71c   :  { %v2941_v5 = vpop.eup %2940 }
 0x71d   :  { %701 = vrot.lane.b32.xlu0 %v2941_v5, %s3052_s23 }
 0x71e   :  { %v2943_v9 = vpop.eup %2942 }
 0x71f   :  { %v696_v11 = vadd.f32 1.0, %v2943_v9 }
 0x721   :  { %v697_v13 = vmul.f32 0.5, %v696_v11 }
 0x723   :  { %v699_v22 = vmul.f32 %v697_v13, %v611_v60 }
 0x78f   :  { %v702_v15 = vpop.permute.xlu0 %701 }
 0x790   :  { %v704_v20 = vmul.f32 %v702_v15, %v697_v13 }
 0x792   :  { %706 = vrot.lane.b32.xlu1 %v704_v20, %s3053_s24 }
 0x804   :  { %v707_v24 = vpop.permute.xlu1 %706 }
 0x805   :  { %v709_v26 = vadd.f32 %v707_v24, %v699_v22 }
 0x807   :  { %2944 = vtanh.f32 %v709_v26 }
 0x814   :  { %v2945_v28 = vpop.eup %2944 }
 0x815   :  { %712 = vrot.lane.b32.xlu0 %v2945_v28, %s3053_s24 }
 0x887   :  { %v713_v6 = vpop.permute.xlu0 %712 }
 0x888   :  { %v715_v29 = vmul.f32 %v713_v6, %v697_v13 }
 0x88a   :  { %717 = vrot.lane.b32.xlu1 %v715_v29, %s3054_s25 }
 0x8fc   :  { %v718_v31 = vpop.permute.xlu1 %717 }
 0x8fd   :  { %2799 = vmatmul.mubr.msk.f32.vlgmr.msra.gmra.mxu0 %vm423_vm4, %v718_v31 }
 0x8fe   :  { %2809 = vmatpush3.msra.mxu0 %v3148_v18  ;;  %2812 = vmatprep.mubr.msk.f32.mxu0 %vm3051_vm2, %v3050_v17 }
 0x8ff   :  { %2810 = vmatprep.subr.mxu0 %v3050_v17 }
 0x900   :  { %2811 = vmatpush3.msra.mxu0 %v3155_v19 }
 0x901   :  { %2822 = vmatprep.subr.mxu0 %v3050_v17 }
 0x9bd   :  { %v787_v32 = vpop.f32.mrf.mxu0 }
 0x9be   :  { %v791_v33 = vadd.f32 %v787_v32, %v3194_v4 }
 0x9bf   :  { %v2800_v34 = vpop.f32.mrf.mxu0 }
 0x9c0   :  { %2946 = vtanh.f32 %v791_v33  ;;  %v792_v36 = vmul.f32 0.5, %v791_v33 }
 0x9c2   :  { %2948 = vtanh.f32 %v792_v36 }
 0x9cd   :  { %v2947_v35 = vpop.eup %2946 }
 0x9ce   :  { %799 = vrot.lane.b32.xlu0 %v2947_v35, %s3052_s23 }
 0x9cf   :  { %v2949_v37 = vpop.eup %2948 }
 0x9d0   :  { %v794_v38 = vadd.f32 1.0, %v2949_v37 }
 0x9d2   :  { %v795_v39 = vmul.f32 0.5, %v794_v38 }
 0x9d4   :  { %v797_v42 = vmul.f32 %v795_v39, %v709_v26 }
 0xa40   :  { %v800_v40 = vpop.permute.xlu0 %799 }
 0xa41   :  { %v802_v41 = vmul.f32 %v800_v40, %v795_v39 }
 0xa43   :  { %804 = vrot.lane.b32.xlu1 %v802_v41, %s3053_s24 }
 0xab5   :  { %v805_v43 = vpop.permute.xlu1 %804 }
 0xab6   :  { %v807_v44 = vadd.f32 %v805_v43, %v797_v42 }
 0xab8   :  { %2950 = vtanh.f32 %v807_v44 }
 0xac5   :  { %v2951_v45 = vpop.eup %2950 }
 0xac6   :  { %810 = vrot.lane.b32.xlu0 %v2951_v45, %s3053_s24 }
 0xb38   :  { %v811_v4 = vpop.permute.xlu0 %810 }
 0xb39   :  { %v813_v46 = vmul.f32 %v811_v4, %v795_v39 }
 0xb3b   :  { %815 = vrot.lane.b32.xlu1 %v813_v46, %s3054_s25 }
 0xbad   :  { %v816_v47 = vpop.permute.xlu1 %815 }
 0xbae   :  { %2806 = vmatmul.mubr.msk.f32.vlgmr.msra.gmra.mxu1 %vm423_vm4, %v816_v47 }
 0xbaf   :  { %2816 = vmatpush3.msra.mxu1 %v3148_v18  ;;  %2819 = vmatprep.mubr.msk.f32.mxu1 %vm3051_vm2, %v3050_v17 }
 0xbb0   :  { %2817 = vmatprep.subr.mxu1 %v3050_v17 }
 0xbb1   :  { %2818 = vmatpush3.msra.mxu1 %v3155_v19 }
 0xbb2   :  { %2829 = vmatprep.subr.mxu1 %v3050_v17 }
 0xc6e   :  { %v885_v48 = vpop.f32.mrf.mxu1 }
 0xc6f   :  { %v889_v49 = vadd.f32 %v885_v48, %v3200_v10 }
 0xc70   :  { %v2807_v50 = vpop.f32.mrf.mxu1 }
 0xc71   :  { %2952 = vtanh.f32 %v889_v49  ;;  %v890_v52 = vmul.f32 0.5, %v889_v49 }
 0xc73   :  { %2954 = vtanh.f32 %v890_v52 }
 0xc7e   :  { %v2953_v51 = vpop.eup %2952 }
 0xc7f   :  { %897 = vrot.lane.b32.xlu0 %v2953_v51, %s3052_s23 }
 0xc80   :  { %v2955_v53 = vpop.eup %2954 }
 0xc81   :  { %v892_v54 = vadd.f32 1.0, %v2955_v53 }
 0xc83   :  { %v893_v55 = vmul.f32 0.5, %v892_v54 }
 0xc85   :  { %v895_v58 = vmul.f32 %v893_v55, %v807_v44 }
 0xcf1   :  { %v898_v56 = vpop.permute.xlu0 %897 }
 0xcf2   :  { %v900_v57 = vmul.f32 %v898_v56, %v893_v55 }
 0xcf4   :  { %902 = vrot.lane.b32.xlu1 %v900_v57, %s3053_s24 }
 0xd66   :  { %v903_v59 = vpop.permute.xlu1 %902 }
 0xd67   :  { %v905_v60 = vadd.f32 %v903_v59, %v895_v58 }
 0xd69   :  { %2956 = vtanh.f32 %v905_v60 }
 0xd76   :  { %v2957_v61 = vpop.eup %2956 }
 0xd77   :  { %908 = vrot.lane.b32.xlu0 %v2957_v61, %s3053_s24 }
 0xde9   :  { %v909_v10 = vpop.permute.xlu0 %908 }
 0xdea   :  { %v911_v62 = vmul.f32 %v909_v10, %v893_v55 }
 0xdec   :  { %913 = vrot.lane.b32.xlu1 %v911_v62, %s3054_s25 }
 0xe5e   :  { %v914_v63 = vpop.permute.xlu1 %913 }
 0xe5f   :  { %2813 = vmatmul.mubr.msk.f32.vlgmr.msra.gmra.mxu0 %vm423_vm4, %v914_v63 }
 0xe60   :  { %2823 = vmatpush3.msra.mxu0 %v3148_v18  ;;  %2826 = vmatprep.mubr.msk.f32.mxu0 %vm3051_vm2, %v3050_v17 }
 0xe61   :  { %2824 = vmatprep.subr.mxu0 %v3050_v17 }
 0xe62   :  { %2825 = vmatpush3.msra.mxu0 %v3155_v19 }
 0xe63   :  { %2836 = vmatprep.subr.mxu0 %v3050_v17 }
 0xf1f   :  { %v983_v0 = vpop.f32.mrf.mxu0 }
 0xf20   :  { %v987_v1 = vadd.f32 %v983_v0, %v3198_v8 }
 0xf21   :  { %v2814_v2 = vpop.f32.mrf.mxu0 }
 0xf22   :  { %2958 = vtanh.f32 %v987_v1  ;;  %v988_v5 = vmul.f32 0.5, %v987_v1 }
 0xf24   :  { %2960 = vtanh.f32 %v988_v5 }
 0xf2f   :  { %v2959_v3 = vpop.eup %2958 }
 0xf30   :  { %995 = vrot.lane.b32.xlu0 %v2959_v3, %s3052_s23 }
 0xf31   :  { %v2961_v7 = vpop.eup %2960 }
 0xf32   :  { %v990_v9 = vadd.f32 1.0, %v2961_v7 }
 0xf34   :  { %v991_v11 = vmul.f32 0.5, %v990_v9 }
 0xf36   :  { %v993_v20 = vmul.f32 %v991_v11, %v905_v60 }
 0xfa2   :  { %v996_v13 = vpop.permute.xlu0 %995 }
 0xfa3   :  { %v998_v15 = vmul.f32 %v996_v13, %v991_v11 }
 0xfa5   :  { %1000 = vrot.lane.b32.xlu1 %v998_v15, %s3053_s24 }
0x1017   :  { %v1001_v22 = vpop.permute.xlu1 %1000 }
0x1018   :  { %v1003_v24 = vadd.f32 %v1001_v22, %v993_v20 }
0x101a   :  { %2962 = vtanh.f32 %v1003_v24 }
0x1027   :  { %v2963_v26 = vpop.eup %2962 }
0x1028   :  { %1006 = vrot.lane.b32.xlu0 %v2963_v26, %s3053_s24 }
0x109a   :  { %v1007_v8 = vpop.permute.xlu0 %1006 }
0x109b   :  { %v1009_v28 = vmul.f32 %v1007_v8, %v991_v11 }
0x109d   :  { %1011 = vrot.lane.b32.xlu1 %v1009_v28, %s3054_s25 }
0x110f   :  { %v1012_v6 = vpop.permute.xlu1 %1011 }
0x1110   :  { %2820 = vmatmul.mubr.msk.f32.vlgmr.msra.gmra.mxu1 %vm423_vm4, %v1012_v6 }
0x1111   :  { %2830 = vmatpush3.msra.mxu1 %v3148_v18  ;;  %2833 = vmatprep.mubr.msk.f32.mxu1 %vm3051_vm2, %v3050_v17 }
0x1112   :  { %2831 = vmatprep.subr.mxu1 %v3050_v17 }
0x1113   :  { %2832 = vmatpush3.msra.mxu1 %v3155_v19 }
0x1114   :  { %2843 = vmatprep.subr.mxu1 %v3050_v17 }
0x11d0   :  { %v1081_v29 = vpop.f32.mrf.mxu1 }
0x11d1   :  { %v1085_v31 = vadd.f32 %v1081_v29, %v3204_v14 }
0x11d2   :  { %v2821_v32 = vpop.f32.mrf.mxu1 }
0x11d3   :  { %2964 = vtanh.f32 %v1085_v31  ;;  %v1086_v34 = vmul.f32 0.5, %v1085_v31 }
0x11d5   :  { %2966 = vtanh.f32 %v1086_v34 }
0x11e0   :  { %v2965_v33 = vpop.eup %2964 }
0x11e1   :  { %1093 = vrot.lane.b32.xlu0 %v2965_v33, %s3052_s23 }
0x11e2   :  { %v2967_v35 = vpop.eup %2966 }
0x11e3   :  { %v1088_v36 = vadd.f32 1.0, %v2967_v35 }
0x11e5   :  { %v1089_v37 = vmul.f32 0.5, %v1088_v36 }
0x11e7   :  { %v1091_v40 = vmul.f32 %v1089_v37, %v1003_v24 }
0x1253   :  { %v1094_v38 = vpop.permute.xlu0 %1093 }
0x1254   :  { %v1096_v39 = vmul.f32 %v1094_v38, %v1089_v37 }
0x1256   :  { %1098 = vrot.lane.b32.xlu1 %v1096_v39, %s3053_s24 }
0x12c8   :  { %v1099_v41 = vpop.permute.xlu1 %1098 }
0x12c9   :  { %v1101_v42 = vadd.f32 %v1099_v41, %v1091_v40 }
0x12cb   :  { %2968 = vtanh.f32 %v1101_v42 }
0x12d8   :  { %v2969_v43 = vpop.eup %2968 }
0x12d9   :  { %1104 = vrot.lane.b32.xlu0 %v2969_v43, %s3053_s24 }
0x134b   :  { %v1105_v14 = vpop.permute.xlu0 %1104 }
0x134c   :  { %v1107_v44 = vmul.f32 %v1105_v14, %v1089_v37 }
0x134e   :  { %1109 = vrot.lane.b32.xlu1 %v1107_v44, %s3054_s25 }
0x13c0   :  { %v1110_v45 = vpop.permute.xlu1 %1109 }
0x13c1   :  { %2827 = vmatmul.mubr.msk.f32.vlgmr.msra.gmra.mxu0 %vm423_vm4, %v1110_v45 }
0x13c2   :  { %2837 = vmatpush3.msra.mxu0 %v3148_v18  ;;  %2840 = vmatprep.mubr.msk.f32.mxu0 %vm3051_vm2, %v3050_v17 }
0x13c3   :  { %2838 = vmatprep.subr.mxu0 %v3050_v17 }
0x13c4   :  { %2839 = vmatpush3.msra.mxu0 %v3155_v19 }
0x13c5   :  { %2850 = vmatprep.subr.mxu0 %v3050_v17 }
0x1481   :  { %v1179_v4 = vpop.f32.mrf.mxu0 }
0x1482   :  { %v1183_v46 = vadd.f32 %v1179_v4, %v3202_v12 }
0x1483   :  { %v2828_v47 = vpop.f32.mrf.mxu0 }
0x1484   :  { %2970 = vtanh.f32 %v1183_v46  ;;  %v1184_v49 = vmul.f32 0.5, %v1183_v46 }
0x1486   :  { %2972 = vtanh.f32 %v1184_v49 }
0x1491   :  { %v2971_v48 = vpop.eup %2970 }
0x1492   :  { %1191 = vrot.lane.b32.xlu0 %v2971_v48, %s3052_s23 }
0x1493   :  { %v2973_v50 = vpop.eup %2972 }
0x1494   :  { %v1186_v51 = vadd.f32 1.0, %v2973_v50 }
0x1496   :  { %v1187_v52 = vmul.f32 0.5, %v1186_v51 }
0x1498   :  { %v1189_v55 = vmul.f32 %v1187_v52, %v1101_v42 }
0x1504   :  { %v1192_v53 = vpop.permute.xlu0 %1191 }
0x1505   :  { %v1194_v54 = vmul.f32 %v1192_v53, %v1187_v52 }
0x1507   :  { %1196 = vrot.lane.b32.xlu1 %v1194_v54, %s3053_s24 }
0x1579   :  { %v1197_v56 = vpop.permute.xlu1 %1196 }
0x157a   :  { %v1199_v57 = vadd.f32 %v1197_v56, %v1189_v55 }
0x157c   :  { %2974 = vtanh.f32 %v1199_v57 }
0x1589   :  { %v2975_v58 = vpop.eup %2974 }
0x158a   :  { %1202 = vrot.lane.b32.xlu0 %v2975_v58, %s3053_s24 }
0x15fc   :  { %v1203_v12 = vpop.permute.xlu0 %1202 }
0x15fd   :  { %v1205_v59 = vmul.f32 %v1203_v12, %v1187_v52 }
0x15ff   :  { %1207 = vrot.lane.b32.xlu1 %v1205_v59, %s3054_s25 }
0x1671   :  { %v1208_v60 = vpop.permute.xlu1 %1207 }
0x1672   :  { %2834 = vmatmul.mubr.msk.f32.vlgmr.msra.gmra.mxu1 %vm423_vm4, %v1208_v60 }
0x1673   :  { %2844 = vmatpush3.msra.mxu1 %v3148_v18  ;;  %2847 = vmatprep.mubr.msk.f32.mxu1 %vm3051_vm2, %v3050_v17 }
0x1674   :  { %2845 = vmatprep.subr.mxu1 %v3050_v17 }
0x1675   :  { %2846 = vmatpush3.msra.mxu1 %v3155_v19 }
0x1676   :  { %2857 = vmatprep.subr.mxu1 %v3050_v17 }
0x1732   :  { %v1277_v61 = vpop.f32.mrf.mxu1 }
0x1733   :  { %v1281_v10 = vadd.f32 %v1277_v61, %v3208_v21 }
0x1734   :  { %v2835_v62 = vpop.f32.mrf.mxu1 }
0x1735   :  { %2976 = vtanh.f32 %v1281_v10  ;;  %v1282_v0 = vmul.f32 0.5, %v1281_v10 }
0x1737   :  { %2978 = vtanh.f32 %v1282_v0 }
0x1742   :  { %v2977_v63 = vpop.eup %2976 }
0x1743   :  { %1289 = vrot.lane.b32.xlu0 %v2977_v63, %s3052_s23 }
0x1744   :  { %v2979_v1 = vpop.eup %2978 }
0x1745   :  { %v1284_v2 = vadd.f32 1.0, %v2979_v1 }
0x1747   :  { %v1285_v3 = vmul.f32 0.5, %v1284_v2 }
0x1749   :  { %v1287_v9 = vmul.f32 %v1285_v3, %v1199_v57 }
0x17b5   :  { %v1290_v5 = vpop.permute.xlu0 %1289 }
0x17b6   :  { %v1292_v7 = vmul.f32 %v1290_v5, %v1285_v3 }
0x17b8   :  { %1294 = vrot.lane.b32.xlu1 %v1292_v7, %s3053_s24 }
0x182a   :  { %v1295_v11 = vpop.permute.xlu1 %1294 }
0x182b   :  { %v1297_v13 = vadd.f32 %v1295_v11, %v1287_v9 }
0x182d   :  { %2980 = vtanh.f32 %v1297_v13 }
0x183a   :  { %v2981_v15 = vpop.eup %2980 }
0x183b   :  { %1300 = vrot.lane.b32.xlu0 %v2981_v15, %s3053_s24 }
0x18ad   :  { %v1301_v21 = vpop.permute.xlu0 %1300 }
0x18ae   :  { %v1303_v20 = vmul.f32 %v1301_v21, %v1285_v3 }
0x18b0   :  { %1305 = vrot.lane.b32.xlu1 %v1303_v20, %s3054_s25 }
0x1922   :  { %v1306_v22 = vpop.permute.xlu1 %1305 }
0x1923   :  { %2841 = vmatmul.mubr.msk.f32.vlgmr.msra.gmra.mxu0 %vm423_vm4, %v1306_v22 }
0x1924   :  { %2851 = vmatpush3.msra.mxu0 %v3148_v18  ;;  %2854 = vmatprep.mubr.msk.f32.mxu0 %vm3051_vm2, %v3050_v17 }
0x1925   :  { %2852 = vmatprep.subr.mxu0 %v3050_v17 }
0x1926   :  { %2853 = vmatpush3.msra.mxu0 %v3155_v19 }
0x1927   :  { %2864 = vmatprep.subr.mxu0 %v3050_v17 }
0x19e3   :  { %v1375_v24 = vpop.f32.mrf.mxu0 }
0x19e4   :  { %v1379_v26 = vadd.f32 %v1375_v24, %v3206_v16 }
0x19e5   :  { %v2842_v8 = vpop.f32.mrf.mxu0 }
0x19e6   :  { %2982 = vtanh.f32 %v1379_v26  ;;  %v1380_v6 = vmul.f32 0.5, %v1379_v26 }
0x19e8   :  { %2984 = vtanh.f32 %v1380_v6 }
0x19f3   :  { %v2983_v28 = vpop.eup %2982 }
0x19f4   :  { %1387 = vrot.lane.b32.xlu0 %v2983_v28, %s3052_s23 }
0x19f5   :  { %v2985_v29 = vpop.eup %2984 }
0x19f6   :  { %v1382_v31 = vadd.f32 1.0, %v2985_v29 }
0x19f8   :  { %v1383_v32 = vmul.f32 0.5, %v1382_v31 }
0x19fa   :  { %v1385_v35 = vmul.f32 %v1383_v32, %v1297_v13 }
0x1a66   :  { %v1388_v33 = vpop.permute.xlu0 %1387 }
0x1a67   :  { %v1390_v34 = vmul.f32 %v1388_v33, %v1383_v32 }
0x1a69   :  { %1392 = vrot.lane.b32.xlu1 %v1390_v34, %s3053_s24 }
0x1adb   :  { %v1393_v36 = vpop.permute.xlu1 %1392 }
0x1adc   :  { %v1395_v37 = vadd.f32 %v1393_v36, %v1385_v35 }
0x1ade   :  { %2986 = vtanh.f32 %v1395_v37 }
0x1aeb   :  { %v2987_v38 = vpop.eup %2986 }
0x1aec   :  { %1398 = vrot.lane.b32.xlu0 %v2987_v38, %s3053_s24 }
0x1b5e   :  { %v1399_v16 = vpop.permute.xlu0 %1398 }
0x1b5f   :  { %v1401_v39 = vmul.f32 %v1399_v16, %v1383_v32 }
0x1b61   :  { %1403 = vrot.lane.b32.xlu1 %v1401_v39, %s3054_s25 }
0x1bd3   :  { %v1404_v40 = vpop.permute.xlu1 %1403 }
0x1bd4   :  { %2848 = vmatmul.mubr.msk.f32.vlgmr.msra.gmra.mxu1 %vm423_vm4, %v1404_v40 }
0x1bd5   :  { %2858 = vmatpush3.msra.mxu1 %v3148_v18  ;;  %2861 = vmatprep.mubr.msk.f32.mxu1 %vm3051_vm2, %v3050_v17 }
0x1bd6   :  { %2859 = vmatprep.subr.mxu1 %v3050_v17 }
0x1bd7   :  { %2860 = vmatpush3.msra.mxu1 %v3155_v19 }
0x1bd8   :  { %2871 = vmatprep.subr.mxu1 %v3050_v17 }
0x1c94   :  { %v1473_v41 = vpop.f32.mrf.mxu1 }
0x1c95   :  { %v1477_v42 = vadd.f32 %v1473_v41, %v3212_v25 }
0x1c96   :  { %v2849_v43 = vpop.f32.mrf.mxu1 }
0x1c97   :  { %2988 = vtanh.f32 %v1477_v42  ;;  %v1478_v44 = vmul.f32 0.5, %v1477_v42  ;;  %v33_v43 = vld [vmem:[%s3496_s1 + $0x38] sm:$0xff] }
0x1c99   :  { %2990 = vtanh.f32 %v1478_v44 }
0x1ca4   :  { %v2989_v14 = vpop.eup %2988 }
0x1ca5   :  { %1485 = vrot.lane.b32.xlu0 %v2989_v14, %s3052_s23  ;;  %v3376_v14 = vld [vmem:[%s3496_s1 + $0x48] sm:$0xf] }
0x1ca6   :  { %v2991_v45 = vpop.eup %2990 }
0x1ca7   :  { %v1480_v4 = vadd.f32 1.0, %v2991_v45 }
0x1ca9   :  { %v1481_v46 = vmul.f32 0.5, %v1480_v4 }
0x1cab   :  { %v1483_v49 = vmul.f32 %v1481_v46, %v1395_v37 }
0x1d17   :  { %v1486_v47 = vpop.permute.xlu0 %1485 }
0x1d18   :  { %v1488_v48 = vmul.f32 %v1486_v47, %v1481_v46 }
0x1d1a   :  { %1490 = vrot.lane.b32.xlu1 %v1488_v48, %s3053_s24 }
0x1d8c   :  { %v1491_v50 = vpop.permute.xlu1 %1490 }
0x1d8d   :  { %v1493_v51 = vadd.f32 %v1491_v50, %v1483_v49  ;;  %v2617_v49 = vld [vmem:[%s3496_s1 + $0x50] ss:$0 sm:$0xff] }
0x1d8f   :  { %2992 = vtanh.f32 %v1493_v51 }
0x1d9c   :  { %v2993_v52 = vpop.eup %2992 }
0x1d9d   :  { %1496 = vrot.lane.b32.xlu0 %v2993_v52, %s3053_s24 }
0x1e0f   :  { %v1497_v25 = vpop.permute.xlu0 %1496 }
0x1e10   :  { %v1499_v53 = vmul.f32 %v1497_v25, %v1481_v46 }
0x1e12   :  { %1501 = vrot.lane.b32.xlu1 %v1499_v53, %s3054_s25 }
0x1e84   :  { %v1502_v54 = vpop.permute.xlu1 %1501 }
0x1e85   :  { %2855 = vmatmul.mubr.msk.f32.vlgmr.msra.gmra.mxu0 %vm423_vm4, %v1502_v54 }
0x1e86   :  { %2865 = vmatpush3.msra.mxu0 %v3148_v18  ;;  %2868 = vmatprep.mubr.msk.f32.mxu0 %vm3051_vm2, %v3050_v17 }
0x1e87   :  { %2866 = vmatprep.subr.mxu0 %v3050_v17 }
0x1e88   :  { %2867 = vmatpush3.msra.mxu0 %v3155_v19 }
0x1e89   :  { %2878 = vmatprep.subr.mxu0 %v3050_v17 }
0x1f45   :  { %v1571_v55 = vpop.f32.mrf.mxu0 }
0x1f46   :  { %v1575_v56 = vadd.f32 %v1571_v55, %v3210_v23 }
0x1f47   :  { %v2856_v57 = vpop.f32.mrf.mxu0 }
0x1f48   :  { %2994 = vtanh.f32 %v1575_v56  ;;  %v1576_v12 = vmul.f32 0.5, %v1575_v56 }
0x1f4a   :  { %2996 = vtanh.f32 %v1576_v12 }
0x1f55   :  { %v2995_v58 = vpop.eup %2994 }
0x1f56   :  { %1583 = vrot.lane.b32.xlu0 %v2995_v58, %s3052_s23 }
0x1f57   :  { %v2997_v18 = vpop.eup %2996 }
0x1f58   :  { %v1578_v59 = vadd.f32 1.0, %v2997_v18 }
0x1f5a   :  { %v1579_v60 = vmul.f32 0.5, %v1578_v59 }
0x1f5c   :  { %v1581_v19 = vmul.f32 %v1579_v60, %v1493_v51 }
0x1fc8   :  { %v1584_v61 = vpop.permute.xlu0 %1583 }
0x1fc9   :  { %v1586_v10 = vmul.f32 %v1584_v61, %v1579_v60 }
0x1fcb   :  { %1588 = vrot.lane.b32.xlu1 %v1586_v10, %s3053_s24 }
0x203d   :  { %v1589_v62 = vpop.permute.xlu1 %1588 }
0x203e   :  { %v1591_v63 = vadd.f32 %v1589_v62, %v1581_v19 }
0x2040   :  { %2998 = vtanh.f32 %v1591_v63 }
0x204d   :  { %v2999_v0 = vpop.eup %2998 }
0x204e   :  { %1594 = vrot.lane.b32.xlu0 %v2999_v0, %s3053_s24 }
0x20c0   :  { %v1595_v23 = vpop.permute.xlu0 %1594 }
0x20c1   :  { %v1597_v1 = vmul.f32 %v1595_v23, %v1579_v60 }
0x20c3   :  { %1599 = vrot.lane.b32.xlu1 %v1597_v1, %s3054_s25 }
0x2135   :  { %v1600_v2 = vpop.permute.xlu1 %1599 }
0x2136   :  { %2862 = vmatmul.mubr.msk.f32.vlgmr.msra.gmra.mxu1 %vm423_vm4, %v1600_v2 }
0x2137   :  { %2875 = vmatprep.mubr.msk.f32.mxu1 %vm3051_vm2, %v3050_v17 }
0x21f6   :  { %v1669_v3 = vpop.f32.mrf.mxu1 }
0x21f7   :  { %v1673_v5 = vadd.f32 %v1669_v3, %v3216_v30 }
0x21f8   :  { %v2863_v7 = vpop.f32.mrf.mxu1 }
0x21f9   :  { %3000 = vtanh.f32 %v1673_v5  ;;  %v1674_v11 = vmul.f32 0.5, %v1673_v5 }
0x21fb   :  { %3002 = vtanh.f32 %v1674_v11 }
0x2206   :  { %v3001_v9 = vpop.eup %3000 }
0x2207   :  { %1681 = vrot.lane.b32.xlu0 %v3001_v9, %s3052_s23 }
0x2208   :  { %v3003_v13 = vpop.eup %3002 }
0x2209   :  { %v1676_v15 = vadd.f32 1.0, %v3003_v13 }
0x220b   :  { %v1677_v21 = vmul.f32 0.5, %v1676_v15 }
0x220d   :  { %v1679_v24 = vmul.f32 %v1677_v21, %v1591_v63 }
0x2279   :  { %v1682_v20 = vpop.permute.xlu0 %1681 }
0x227a   :  { %v1684_v22 = vmul.f32 %v1682_v20, %v1677_v21 }
0x227c   :  { %1686 = vrot.lane.b32.xlu1 %v1684_v22, %s3053_s24 }
0x22ee   :  { %v1687_v26 = vpop.permute.xlu1 %1686 }
0x22ef   :  { %v1689_v8 = vadd.f32 %v1687_v26, %v1679_v24 }
0x22f1   :  { %3004 = vtanh.f32 %v1689_v8 }
0x22fe   :  { %v3005_v28 = vpop.eup %3004 }
0x22ff   :  { %1692 = vrot.lane.b32.xlu0 %v3005_v28, %s3053_s24 }
0x2371   :  { %v1693_v30 = vpop.permute.xlu0 %1692 }
0x2372   :  { %v1695_v6 = vmul.f32 %v1693_v30, %v1677_v21 }
0x2374   :  { %1697 = vrot.lane.b32.xlu1 %v1695_v6, %s3054_s25 }
0x23e6   :  { %v1698_v29 = vpop.permute.xlu1 %1697 }
0x23e7   :  { %2869 = vmatmul.mubr.msk.f32.vlgmr.msra.gmra.mxu0 %vm423_vm4, %v1698_v29 }
0x23e8   :  { %2880 = vmatprep.mubr.msk.f32.mxu0 %vm3051_vm2, %v3050_v17  ;;  %2879 = vmatpush3.msk.msra.mxu0 %vm88_vm0, %v3376_v14 }
0x23e9   :  { %2888 = vmatprep.subr.mxu0 %v3050_v17 }
0x23eb   :  { %2881 = vmatmul.mubr.f32.vlgmr.msra.gmra.mxu0 %v3050_v17 }
0x23ec   :  { %2889 = vmatpush3.msk.msra.mxu0 %vm88_vm0, %v3376_v14  ;;  %2890 = vmatprep.mubr.msk.f32.mxu0 %vm3051_vm2, %v3050_v17 }
0x23ed   :  { %2898 = vmatprep.subr.mxu0 %v3050_v17 }
0x24a7   :  { %v1767_v31 = vpop.f32.mrf.mxu0 }
0x24a8   :  { %v1771_v32 = vadd.f32 %v1767_v31, %v3214_v27  ;;  %v34_v27 = vld [vmem:[%s3496_s1 + $0x40] sm:$0xff] }
0x24a9   :  { %v2870_v33 = vpop.f32.mrf.mxu0  ;;  %2872 = vmatpush3.msra.mxu1 %v34_v27 }
0x24aa   :  { %3006 = vtanh.f32 %v1771_v32  ;;  %v1772_v35 = vmul.f32 0.5, %v1771_v32  ;;  %2873 = vmatprep.subr.mxu1 %v3050_v17 }
0x24ab   :  { %2874 = vmatpush3.msra.mxu1 %v33_v43  ;;  %v1945_v47 = vpop.f32.mrf.mxu0 }
0x24ac   :  { %3008 = vtanh.f32 %v1772_v35  ;;  %2883 = vmatprep.subr.mxu1 %v3050_v17 }
0x24ad   :  { %v2882_v48 = vpop.f32.mrf.mxu0 }
0x24b7   :  { %v3007_v34 = vpop.eup %3006 }
0x24b8   :  { %1779 = vrot.lane.b32.xlu0 %v3007_v34, %s3052_s23 }
0x24b9   :  { %v3009_v36 = vpop.eup %3008 }
0x24ba   :  { %v1774_v37 = vadd.f32 1.0, %v3009_v36 }
0x24bc   :  { %v1775_v38 = vmul.f32 0.5, %v1774_v37 }
0x24be   :  { %v1777_v40 = vmul.f32 %v1775_v38, %v1689_v8 }
0x252a   :  { %v1780_v16 = vpop.permute.xlu0 %1779 }
0x252b   :  { %v1782_v39 = vmul.f32 %v1780_v16, %v1775_v38 }
0x252d   :  { %1784 = vrot.lane.b32.xlu1 %v1782_v39, %s3053_s24 }
0x259f   :  { %v1785_v41 = vpop.permute.xlu1 %1784 }
0x25a0   :  { %v1787_v42 = vadd.f32 %v1785_v41, %v1777_v40 }
0x25a2   :  { %3010 = vtanh.f32 %v1787_v42 }
0x25af   :  { %v3011_v44 = vpop.eup %3010 }
0x25b0   :  { %1790 = vrot.lane.b32.xlu0 %v3011_v44, %s3053_s24 }
0x2622   :  { %v1791_v45 = vpop.permute.xlu0 %1790 }
0x2623   :  { %v1793_v4 = vmul.f32 %v1791_v45, %v1775_v38 }
0x2625   :  { %1799 = vrot.lane.b32.xlu1 %v1793_v4, %s3054_s25 }
0x2697   :  { %v1800_v46 = vpop.permute.xlu1 %1799 }
0x2698   :  { %2876 = vmatmul.mubr.msk.f32.vlgmr.msra.gmra.mxu1 %vm423_vm4, %v1800_v46 }
0x2699   :  { %2884 = vmatpush3.msk.msra.mxu1 %vm88_vm0, %v3376_v14  ;;  %2885 = vmatprep.mubr.msk.f32.mxu1 %vm3051_vm2, %v3050_v17 }
0x269a   :  { %2893 = vmatprep.subr.mxu1 %v3050_v17 }
0x2758   :  { %v1869_v50 = vpop.f32.mrf.mxu1 }
0x2759   :  { %v3400_v51 = vadd.f32 %v2617_v49, %v1869_v50 }
0x275a   :  { %v2877_v52 = vpop.f32.mrf.mxu1 }
0x275b   :  { %v1949_v25 = vadd.f32 %v1945_v47, %v3400_v51 }
0x275d   :  { %3012 = vtanh.f32 %v1949_v25  ;;  %v1950_v54 = vmul.f32 0.5, %v1949_v25 }
0x275f   :  { %3014 = vtanh.f32 %v1950_v54 }
0x276a   :  { %v3013_v53 = vpop.eup %3012 }
0x276b   :  { %1957 = vrot.lane.b32.xlu0 %v3013_v53, %s3055_s6 }
0x276c   :  { %v3015_v55 = vpop.eup %3014 }
0x276d   :  { %v1952_v56 = vadd.f32 1.0, %v3015_v55 }
0x276f   :  { %v1953_v57 = vmul.f32 0.5, %v1952_v56 }
0x2771   :  { %v1955_v18 = vmul.f32 0.0, %v1953_v57 }
0x27dd   :  { %v1958_v58 = vpop.permute.xlu0 %1957 }
0x27de   :  { %v1960_v12 = vmul.f32 %v1958_v58, %v1953_v57 }
0x27e0   :  { %1962 = vrot.lane.b32.xlu1 %v1960_v12, %s3056_s7 }
0x2852   :  { %v1963_v59 = vpop.permute.xlu1 %1962 }
0x2853   :  { %v1965_v60 = vadd.f32 %v1963_v59, %v1955_v18 }
0x2855   :  { %3016 = vtanh.f32 %v1965_v60 }
0x2862   :  { %v3017_v61 = vpop.eup %3016 }
0x2863   :  { %1968 = vrot.lane.b32.xlu0 %v3017_v61, %s3056_s7 }
0x28d5   :  { %v1969_v10 = vpop.permute.xlu0 %1968 }
0x28d6   :  { %v1971_v19 = vmul.f32 %v1969_v10, %v1953_v57 }
0x28d8   :  { %1973 = vrot.lane.b32.xlu1 %v1971_v19, %s3057_s8 }
0x294a   :  { %v3407_v62 = vpop.permute.xlu1 %1973 }
0x294b   :  { %2886 = vmatmul.mubr.msk.f32.vlgmr.msra.gmra.mxu1 %vm1873_vm5, %v3407_v62 }
0x294c   :  { %2894 = vmatpush3.msk.msra.mxu1 %vm88_vm0, %v3376_v14  ;;  %2895 = vmatprep.mubr.msk.f32.mxu1 %vm3051_vm2, %v3050_v17 }
0x294d   :  { %2903 = vmatprep.subr.mxu1 %v3050_v17 }
0x2a0b   :  { %v2043_v63 = vpop.f32.mrf.mxu1 }
0x2a0c   :  { %v2047_v0 = vadd.f32 %v2043_v63, %v3400_v51 }
0x2a0d   :  { %v2887_v23 = vpop.f32.mrf.mxu1 }
0x2a0e   :  { %3018 = vtanh.f32 %v2047_v0  ;;  %v2048_v2 = vmul.f32 0.5, %v2047_v0 }
0x2a10   :  { %3020 = vtanh.f32 %v2048_v2 }
0x2a1b   :  { %v3019_v1 = vpop.eup %3018 }
0x2a1c   :  { %2055 = vrot.lane.b32.xlu0 %v3019_v1, %s3055_s6 }
0x2a1d   :  { %v3021_v3 = vpop.eup %3020 }
0x2a1e   :  { %v2050_v5 = vadd.f32 1.0, %v3021_v3 }
0x2a20   :  { %v2051_v7 = vmul.f32 0.5, %v2050_v5 }
0x2a22   :  { %v2053_v13 = vmul.f32 %v2051_v7, %v1965_v60 }
0x2a8e   :  { %v2056_v9 = vpop.permute.xlu0 %2055 }
0x2a8f   :  { %v2058_v11 = vmul.f32 %v2056_v9, %v2051_v7 }
0x2a91   :  { %2060 = vrot.lane.b32.xlu1 %v2058_v11, %s3056_s7 }
0x2b03   :  { %v2061_v15 = vpop.permute.xlu1 %2060 }
0x2b04   :  { %v2063_v21 = vadd.f32 %v2061_v15, %v2053_v13 }
0x2b06   :  { %3022 = vtanh.f32 %v2063_v21 }
0x2b13   :  { %v3023_v20 = vpop.eup %3022 }
0x2b14   :  { %2066 = vrot.lane.b32.xlu0 %v3023_v20, %s3056_s7 }
0x2b86   :  { %v2067_v22 = vpop.permute.xlu0 %2066 }
0x2b87   :  { %v3420_v24 = vmul.f32 %v2067_v22, %v2051_v7 }
0x2b89   :  { %2071 = vrot.lane.b32.xlu1 %v3420_v24, %s3057_s8 }
0x2bfb   :  { %v2072_v26 = vpop.permute.xlu1 %2071 }
0x2bfc   :  { %2891 = vmatmul.mubr.msk.f32.vlgmr.msra.gmra.mxu0 %vm1873_vm5, %v2072_v26 }
0x2bfd   :  { %2899 = vmatpush3.msk.msra.mxu0 %vm88_vm0, %v3376_v14  ;;  %2900 = vmatprep.mubr.msk.f32.mxu0 %vm3051_vm2, %v3050_v17 }
0x2bfe   :  { %2908 = vmatprep.subr.mxu0 %v3050_v17 }
0x2cbc   :  { %v2141_v8 = vpop.f32.mrf.mxu0 }
0x2cbd   :  { %v2145_v28 = vadd.f32 %v2141_v8, %v3400_v51 }
0x2cbe   :  { %v2892_v30 = vpop.f32.mrf.mxu0 }
0x2cbf   :  { %3024 = vtanh.f32 %v2145_v28  ;;  %v2146_v29 = vmul.f32 0.5, %v2145_v28  ;;  %v38_v28 = vld [vmem:[%s3496_s1 + $0x60] sm:$0xff]  ;;  %v37_v30 = vld [vmem:[%s3496_s1 + $0x58] sm:$0xff] }
0x2cc1   :  { %3026 = vtanh.f32 %v2146_v29 }
0x2ccc   :  { %v3025_v6 = vpop.eup %3024 }
0x2ccd   :  { %2153 = vrot.lane.b32.xlu0 %v3025_v6, %s3055_s6 }
0x2cce   :  { %v3027_v31 = vpop.eup %3026 }
0x2ccf   :  { %v2148_v32 = vadd.f32 1.0, %v3027_v31 }
0x2cd1   :  { %v2149_v33 = vmul.f32 0.5, %v2148_v32 }
0x2cd3   :  { %v2151_v36 = vmul.f32 %v2149_v33, %v2063_v21 }
0x2d3f   :  { %v2154_v34 = vpop.permute.xlu0 %2153 }
0x2d40   :  { %v2156_v35 = vmul.f32 %v2154_v34, %v2149_v33 }
0x2d42   :  { %2158 = vrot.lane.b32.xlu1 %v2156_v35, %s3056_s7 }
0x2db4   :  { %v2159_v37 = vpop.permute.xlu1 %2158 }
0x2db5   :  { %v2161_v38 = vadd.f32 %v2159_v37, %v2151_v36 }
0x2db7   :  { %3028 = vtanh.f32 %v2161_v38 }
0x2dc4   :  { %v3029_v16 = vpop.eup %3028 }
0x2dc5   :  { %2164 = vrot.lane.b32.xlu0 %v3029_v16, %s3056_s7  ;;  %v2630_v16 = vld [vmem:[%s3496_s1 + $0x70] ss:$0 sm:$0xff] }
0x2e37   :  { %v2165_v39 = vpop.permute.xlu0 %2164 }
0x2e38   :  { %v3434_v40 = vmul.f32 %v2165_v39, %v2149_v33 }
0x2e3a   :  { %2169 = vrot.lane.b32.xlu1 %v3434_v40, %s3057_s8 }
0x2eac   :  { %v2170_v41 = vpop.permute.xlu1 %2169 }
0x2ead   :  { %2896 = vmatmul.mubr.msk.f32.vlgmr.msra.gmra.mxu1 %vm1873_vm5, %v2170_v41 }
0x2eae   :  { %2904 = vmatpush3.msk.msra.mxu1 %vm88_vm0, %v3376_v14  ;;  %2905 = vmatprep.mubr.msk.f32.mxu1 %vm3051_vm2, %v3050_v17 }
0x2f6d   :  { %v2239_v42 = vpop.f32.mrf.mxu1 }
0x2f6e   :  { %v2243_v27 = vadd.f32 %v2239_v42, %v3400_v51 }
0x2f6f   :  { %v2897_v43 = vpop.f32.mrf.mxu1 }
0x2f70   :  { %3030 = vtanh.f32 %v2243_v27  ;;  %v2244_v45 = vmul.f32 0.5, %v2243_v27 }
0x2f72   :  { %3032 = vtanh.f32 %v2244_v45 }
0x2f7d   :  { %v3031_v44 = vpop.eup %3030 }
0x2f7e   :  { %2251 = vrot.lane.b32.xlu0 %v3031_v44, %s3055_s6 }
0x2f7f   :  { %v3033_v4 = vpop.eup %3032 }
0x2f80   :  { %v2246_v46 = vadd.f32 1.0, %v3033_v4 }
0x2f82   :  { %v2247_v47 = vmul.f32 0.5, %v2246_v46 }
0x2f84   :  { %v2249_v14 = vmul.f32 %v2247_v47, %v2161_v38 }
0x2ff0   :  { %v2252_v48 = vpop.permute.xlu0 %2251 }
0x2ff1   :  { %v2254_v49 = vmul.f32 %v2252_v48, %v2247_v47 }
0x2ff3   :  { %2256 = vrot.lane.b32.xlu1 %v2254_v49, %s3056_s7 }
0x3065   :  { %v2257_v50 = vpop.permute.xlu1 %2256 }
0x3066   :  { %v2259_v52 = vadd.f32 %v2257_v50, %v2249_v14 }
0x3068   :  { %3034 = vtanh.f32 %v2259_v52 }
0x3075   :  { %v3035_v25 = vpop.eup %3034 }
0x3076   :  { %2262 = vrot.lane.b32.xlu0 %v3035_v25, %s3056_s7 }
0x30e8   :  { %v2263_v53 = vpop.permute.xlu0 %2262 }
0x30e9   :  { %v3447_v54 = vmul.f32 %v2263_v53, %v2247_v47 }
0x30eb   :  { %2267 = vrot.lane.b32.xlu1 %v3447_v54, %s3057_s8 }
0x315d   :  { %v2268_v55 = vpop.permute.xlu1 %2267 }
0x315e   :  { %2901 = vmatmul.mubr.msk.f32.vlgmr.msra.gmra.mxu0 %vm1873_vm5, %v2268_v55 }
0x315f   :  { %2914 = vmatprep.mubr.msk.f32.mxu0 %vm3051_vm2, %v3050_v17 }
0x321e   :  { %v2337_v56 = vpop.f32.mrf.mxu0 }
0x321f   :  { %v2341_v57 = vadd.f32 %v2337_v56, %v3400_v51 }
0x3220   :  { %v2902_v58 = vpop.f32.mrf.mxu0 }
0x3221   :  { %3036 = vtanh.f32 %v2341_v57  ;;  %v2342_v18 = vmul.f32 0.5, %v2341_v57 }
0x3223   :  { %3038 = vtanh.f32 %v2342_v18 }
0x322e   :  { %v3037_v12 = vpop.eup %3036 }
0x322f   :  { %2349 = vrot.lane.b32.xlu0 %v3037_v12, %s3055_s6 }
0x3230   :  { %v3039_v59 = vpop.eup %3038 }
0x3231   :  { %v2344_v60 = vadd.f32 1.0, %v3039_v59 }
0x3233   :  { %v2345_v61 = vmul.f32 0.5, %v2344_v60 }
0x3235   :  { %v2347_v63 = vmul.f32 %v2345_v61, %v2259_v52 }
0x32a1   :  { %v2350_v10 = vpop.permute.xlu0 %2349 }
0x32a2   :  { %v2352_v19 = vmul.f32 %v2350_v10, %v2345_v61 }
0x32a4   :  { %2354 = vrot.lane.b32.xlu1 %v2352_v19, %s3056_s7 }
0x3316   :  { %v2355_v0 = vpop.permute.xlu1 %2354 }
0x3317   :  { %v2357_v23 = vadd.f32 %v2355_v0, %v2347_v63 }
0x3319   :  { %3040 = vtanh.f32 %v2357_v23 }
0x3326   :  { %v3041_v1 = vpop.eup %3040 }
0x3327   :  { %2360 = vrot.lane.b32.xlu0 %v3041_v1, %s3056_s7 }
0x3399   :  { %v2361_v2 = vpop.permute.xlu0 %2360 }
0x339a   :  { %v2363_v3 = vmul.f32 %v2361_v2, %v2345_v61 }
0x339c   :  { %2365 = vrot.lane.b32.xlu1 %v2363_v3, %s3057_s8 }
0x340e   :  { %v2366_v5 = vpop.permute.xlu1 %2365 }
0x340f   :  { %2906 = vmatmul.mubr.msk.f32.vlgmr.msra.gmra.mxu1 %vm1873_vm5, %v2366_v5 }
0x34cf   :  { %v2435_v7 = vpop.f32.mrf.mxu1 }
0x34d0   :  { %v2439_v9 = vadd.f32 %v2435_v7, %v3400_v51  ;;  %v39_v51 = vld [vmem:[%s3496_s1 + $0x68] sm:$0xf] }
0x34d1   :  { %v2907_v11 = vpop.f32.mrf.mxu1  ;;  %2909 = vmatpush3.msk.msra.mxu0 %vm88_vm0, %v39_v51 }
0x34d2   :  { %3042 = vtanh.f32 %v2439_v9  ;;  %v2440_v15 = vmul.f32 0.5, %v2439_v9  ;;  %2910 = vmatprep.subr.mxu0 %v3050_v17 }
0x34d3   :  { %2911 = vmatpush3.msra.mxu0 %v38_v28 }
0x34d4   :  { %3044 = vtanh.f32 %v2440_v15  ;;  %2912 = vmatprep.subr.mxu0 %v3050_v17 }
0x34d5   :  { %2913 = vmatpush3.msra.mxu0 %v37_v30 }
0x34df   :  { %v3043_v13 = vpop.eup %3042 }
0x34e0   :  { %2447 = vrot.lane.b32.xlu0 %v3043_v13, %s3055_s6 }
0x34e1   :  { %v3045_v21 = vpop.eup %3044 }
0x34e2   :  { %v2442_v20 = vadd.f32 1.0, %v3045_v21 }
0x34e4   :  { %v2443_v22 = vmul.f32 0.5, %v2442_v20 }
0x34e6   :  { %v2445_v6 = vmul.f32 %v2443_v22, %v2357_v23 }
0x3552   :  { %v2448_v26 = vpop.permute.xlu0 %2447 }
0x3553   :  { %v2450_v8 = vmul.f32 %v2448_v26, %v2443_v22 }
0x3555   :  { %2452 = vrot.lane.b32.xlu1 %v2450_v8, %s3056_s7 }
0x3559   :  { %2463 = vrot.lane.b32.xlu1 %v3420_v24, %s3058_s9  ;;  %v25_v24 = vld [vmem:[%s3497_s0 + $0x70] sm:$0xff]  ;;  %s3060_s0 = smov 12  }
0x355a   :  { %2915 = vmatmul.mubr.msk.f32.vlgmr.msra.gmra.mxu0 %vm2480_vm6, %v25_v24 }
0x355d   :  { %2469 = vrot.lane.b32.xlu1 %v2363_v3, %s3059_s14 }
0x35c7   :  { %v2453_v29 = vpop.permute.xlu1 %2452 }
0x35c8   :  { %v2455_v31 = vadd.f32 %v2453_v29, %v2445_v6 }
0x35ca   :  { %3046 = vtanh.f32 %v2455_v31 }
0x35cb   :  { %v2464_v17 = vpop.permute.xlu1 %2463 }
0x35cc   :  { %v2476_v37 = vsel %vm1873_vm5, %v3407_v62, %v2464_v17 }
0x35cd   :  { %v2477_v39 = vsel %vm245_vm3, %v2476_v37, %v3434_v40 }
0x35cf   :  { %v2470_v27 = vpop.permute.xlu1 %2469 }
0x35d7   :  { %v3047_v32 = vpop.eup %3046 }
0x35d8   :  { %2458 = vrot.lane.b32.xlu0 %v3047_v32, %s3056_s7 }
0x35dc   :  { %2466 = vrot.lane.b32.xlu0 %v3447_v54, %s3056_s7 }
0x361a   :  { %v2558_v33 = vpop.f32.mrf.mxu0 }
0x361b   :  { %v2559_v42 = vadd.f32 %v2630_v16, %v2558_v33 }
0x361c   :  { %v2916_v34 = vpop.f32.mrf.mxu0 }
0x364a   :  { %v2459_v35 = vpop.permute.xlu0 %2458 }
0x364b   :  { %v2461_v36 = vmul.f32 %v2459_v35, %v2443_v22 }
0x364d   :  { %2473 = vrot.lane.b32.xlu0 %v2461_v36, %s3060_s0 }
0x364e   :  { %v2467_v38 = vpop.permute.xlu0 %2466 }
0x364f   :  { %v2478_v41 = vsel %vm45_vm1, %v2477_v39, %v2467_v38 }
0x3650   :  { %v2479_v43 = vsel %vm423_vm4, %v2478_v41, %v2470_v27 }
0x36bf   :  { %v2474_v44 = vpop.permute.xlu0 %2473 }
0x36c0   :  { %v2481_v45 = vsel %vm2480_vm6, %v2479_v43, %v2474_v44 }
0x36c1   :  { %v2562_v4 = vadd.f32 %v2559_v42, %v2481_v45 }
0x36c3   :  { %v2563_v46 = vmul.f32 0.5, %v2562_v4 }
0x36c5   :  { %3048 = vtanh.f32 %v2563_v46 }
0x36d2   :  { %v3049_v62 = vpop.eup %3048 }
0x36d3   :  { %v2565_v47 = vadd.f32 1.0, %v3049_v62 }
0x36d5   :  { %v2566_v48 = vmul.f32 0.5, %v2565_v47 }
0x36d7   :  { %2568 = vst.msk [vmem:[%s3498_s2] sm:$0xff] %vm2567_vm7, %v2566_v48 }

</bundles_post_ra>
